<compile_context>
chip_gen: v7x
topology: tpu7x:2x2x1
jax: 0.10.0
libtpu: 0.0.40
codegen_flags: <defaults>
</compile_context>

<pallas_src>
import functools

import numpy as np
import jax
import jax.numpy as jnp
from jax.experimental import pallas as pl
from jax.experimental.pallas import tpu as pltpu


def window_attention_kernel(
    xc_ref, mc_ref, wqkv_ref, bqkv_ref, wp_ref, bp_ref, rpb_ref, oc_ref,
    *, num_heads, n_tokens, windows_per_block, mask_threshold,
):
    H = num_heads
    N = n_tokens
    Bt = windows_per_block
    M = Bt * N
    C = wqkv_ref.shape[0] // 2
    hd = C // H
    G = H * Bt

    # ---- fused QKV(stream1) + V(stream2) projection: one lane-dense GEMM ----
    x = xc_ref[...].astype(jnp.bfloat16)                         # (M, 2C)
    qkvv = jnp.dot(x, wqkv_ref[...],
                   preferred_element_type=jnp.float32) + bqkv_ref[...]  # (M, 4C) f32
    # column groups: [q1*scale | k1 | v1 | v2], each C = H*hd, head-major.
    qkvv = qkvv.astype(jnp.bfloat16)

    # ---- one-time relayout to head-major batched form (g = h*Bt + b) ----
    def group_slabs(g):
        base = g * C
        return [qkvv[:, base + h * hd: base + (h + 1) * hd] for h in range(H)]

    q_b = jnp.concatenate(group_slabs(0), axis=0).reshape(G, N, hd)
    k_b = jnp.concatenate(group_slabs(1), axis=0).reshape(G, N, hd)
    # both streams' V stacked along the batch axis (g2 = s*G + h*Bt + b)
    v_all = jnp.concatenate(group_slabs(2) + group_slabs(3),
                            axis=0).reshape(2 * G, N, hd)

    # ---- all heads / all windows attention scores in one batched dot ----
    s = jnp.einsum('gnd,gmd->gnm', q_b, k_b,
                   preferred_element_type=jnp.float32)            # (G, N, N) f32
    s = s + rpb_ref[...]                                          # pre-tiled (G, N, N)

    # softmax #1 (max-subtracted); softmax #2 in no-max form (a1 in [0,1]).
    mmax = jnp.max(s, axis=-1, keepdims=True)
    e1 = jnp.exp(s - mmax)
    a1 = e1 * pl.reciprocal(jnp.sum(e1, axis=-1, keepdims=True), approx=True)
    e2 = jnp.exp(a1)
    a2 = e2 * pl.reciprocal(jnp.sum(e2, axis=-1, keepdims=True), approx=True)

    # ---- both streams' AV contractions stacked into a single batched dot ----
    a_all = jnp.concatenate([a1, a2], axis=0).astype(jnp.bfloat16)  # (2G, N, N)
    y_all = jnp.einsum('gnm,gmd->gnd', a_all, v_all,
                       preferred_element_type=jnp.float32)          # (2G, N, hd) f32

    # ---- back to token-major packed layout [y1 heads | y2 heads] ----
    y_flat = y_all.reshape(2 * G * N, hd)
    slabs = [y_flat[(s_idx * H + h) * M:(s_idx * H + h + 1) * M, :]
             for s_idx in range(2) for h in range(H)]
    ycat = jnp.concatenate(slabs, axis=1).astype(jnp.bfloat16)      # (M, 2C)

    # ---- block-diagonal output projection: one K=2C GEMM -> packed [o1|o2] --
    out = jnp.dot(ycat, wp_ref[...],
                  preferred_element_type=jnp.float32) + bp_ref[...]  # (M, 2C) f32

    # ---- mask / TokenExchange epilogue (predicate on (M,1), broadcast) ----
    m1c = mc_ref[:, 0:1]                                            # (M, 1) f32
    m2c = mc_ref[:, 1:2]
    y1 = out[:, :C]
    y2 = out[:, C:]
    y1m = y1 * m1c
    y2m = y2 * m2c
    o1 = jnp.where(m1c >= mask_threshold, y1m, y2m)
    o2 = jnp.where(m2c >= mask_threshold, y2m, y1m)
    oc_ref[...] = jnp.concatenate([o1, o2], axis=1).astype(oc_ref.dtype)


def _pick_windows_per_block(B_, N, C):
    """Largest divisor of B_ that keeps >=2 grid steps (v7x megacore) and a
    modest per-step activation footprint, while staying (8,128)-legal."""
    bytes_per_row = 10 * C * 4                     # x/qkvv/y/out f32-equivalent
    row_budget = max(N, (8 << 20) // max(1, bytes_per_row))
    cands = []
    for d in range(1, B_ + 1):
        if B_ % d:
            continue
        blocks = B_ // d
        if blocks >= 2 and (d * N) % 8 == 0 and d * N <= row_budget:
            cands.append(d)
    return max(cands) if cands else B_             # fallback: single full block


def window_attention(x1, x2, m1, m2, params, *, num_heads,
                     mask_threshold=0.2, windows_per_block=None):
    B_, N, C = x1.shape
    assert C % num_heads == 0
    hd = C // num_heads
    scale = float(hd) ** (-0.5)
    f32 = jnp.float32

    if windows_per_block is None:
        windows_per_block = _pick_windows_per_block(B_, N, C)
    Bt = windows_per_block
    assert B_ % Bt == 0, "windows_per_block must divide B_"
    num_blocks = B_ // Bt
    M = Bt * N
    G = num_heads * Bt

    # ---- wrapper-side layout plumbing (pure data movement) ----
    xc = jnp.concatenate([x1.reshape(B_ * N, C), x2.reshape(B_ * N, C)], axis=1)
    mc = jnp.concatenate([m1.reshape(B_ * N, 1), m2.reshape(B_ * N, 1)], axis=1)

    # Stream-1 QKV with the attention scale folded into the Q columns; stream-2
    # only V (q2/k2 dead: attn2 = softmax(attn1)); merged block-diagonally so
    # the kernel does one lane-dense (M,2C)@(2C,4C) GEMM.
    wqkv1 = jnp.concatenate([params["wqkv1"][:, :C] * scale,
                             params["wqkv1"][:, C:]], axis=1)
    bqkv1 = jnp.concatenate([params["bqkv1"][:, :C] * scale,
                             params["bqkv1"][:, C:]], axis=1)
    wv2 = params["wqkv2"][:, 2 * C:]
    bv2 = params["bqkv2"][:, 2 * C:]
    w_fused = jnp.concatenate(
        [jnp.concatenate([wqkv1, jnp.zeros((C, C), f32)], axis=1),
         jnp.concatenate([jnp.zeros((C, 3 * C), f32), wv2], axis=1)],
        axis=0).astype(jnp.bfloat16)                                  # (2C, 4C)
    b_fused = jnp.concatenate([bqkv1, bv2], axis=1)                   # (1, 4C) f32

    # Block-diagonal output projection -> packed [o1 | o2] in one GEMM.
    wp_fused = jnp.concatenate(
        [jnp.concatenate([params["wp1"], jnp.zeros((C, C), f32)], axis=1),
         jnp.concatenate([jnp.zeros((C, C), f32), params["wp2"]], axis=1)],
        axis=0).astype(jnp.bfloat16)                                  # (2C, 2C)
    bp_fused = jnp.concatenate([params["bp1"], params["bp2"]], axis=1)  # (1, 2C)

    # Relative position bias pre-tiled to the head-major batch layout
    # (batch index g = h*Bt + b -> rpb[h]).
    rpb_tiled = jnp.repeat(params["rpb"], Bt, axis=0)                 # (G, N, N)

    tok_spec = pl.BlockSpec((M, 2 * C), lambda b: (b, 0))
    msk_spec = pl.BlockSpec((M, 2), lambda b: (b, 0))

    def full_spec(shape):
        zeros = (0,) * len(shape)
        return pl.BlockSpec(shape, lambda b, _z=zeros: _z)

    kernel = functools.partial(
        window_attention_kernel,
        num_heads=num_heads, n_tokens=N, windows_per_block=Bt,
        mask_threshold=mask_threshold)

    oc = pl.pallas_call(
        kernel,
        out_shape=jax.ShapeDtypeStruct((B_ * N, 2 * C), x1.dtype),
        grid_spec=pltpu.PrefetchScalarGridSpec(
            num_scalar_prefetch=0,
            grid=(num_blocks,),
            in_specs=[tok_spec, msk_spec,
                      full_spec((2 * C, 4 * C)), full_spec((1, 4 * C)),
                      full_spec((2 * C, 2 * C)), full_spec((1, 2 * C)),
                      full_spec((G, N, N))],
            out_specs=tok_spec),
        compiler_params=pltpu.CompilerParams(
            dimension_semantics=("parallel",),
            vmem_limit_bytes=32 * 1024 * 1024),
    )(xc, mc, w_fused, b_fused, wp_fused, bp_fused, rpb_tiled)

    o1 = oc[:, :C].reshape(B_, N, C)
    o2 = oc[:, C:].reshape(B_, N, C)
    return o1, o2


def build_relative_position_index(Wh, Ww):
    coords_h = np.arange(Wh)
    coords_w = np.arange(Ww)
    coords = np.stack(np.meshgrid(coords_h, coords_w, indexing="ij"))   # (2, Wh, Ww)
    coords_flatten = coords.reshape(2, -1)                              # (2, N)
    relative_coords = coords_flatten[:, :, None] - coords_flatten[:, None, :]
    relative_coords = relative_coords.transpose(1, 2, 0).copy()         # (N, N, 2)
    relative_coords[:, :, 0] += Wh - 1
    relative_coords[:, :, 1] += Ww - 1
    relative_coords[:, :, 0] *= 2 * Ww - 1
    return relative_coords.sum(-1)                                      # (N, N)


def init_params(key, dim, window_size, num_heads):
    Wh, Ww = window_size
    N = Wh * Ww
    keys = jax.random.split(key, 9)

    # relative_position_bias_table ~ trunc_normal(std=0.02); plain normal here
    # (deterministic synthetic init, not a checkpoint load).
    table = 0.02 * jax.random.normal(
        keys[0], ((2 * Wh - 1) * (2 * Ww - 1), num_heads), jnp.float32)
    idx = build_relative_position_index(Wh, Ww).reshape(-1)
    rpb = table[idx].reshape(N, N, num_heads).transpose(2, 0, 1)        # (H, N, N)

    def linear(kw, kb, fan_in, fan_out):
        lim = 1.0 / np.sqrt(fan_in)
        w = jax.random.uniform(kw, (fan_in, fan_out), jnp.float32, -lim, lim)
        b = jax.random.uniform(kb, (1, fan_out), jnp.float32, -lim, lim)
        return w, b

    wqkv1, bqkv1 = linear(keys[1], keys[2], dim, 3 * dim)
    wqkv2, bqkv2 = linear(keys[3], keys[4], dim, 3 * dim)
    wp1, bp1 = linear(keys[5], keys[6], dim, dim)
    wp2, bp2 = linear(keys[7], keys[8], dim, dim)

    return dict(rpb=rpb,
                wqkv1=wqkv1, bqkv1=bqkv1, wqkv2=wqkv2, bqkv2=bqkv2,
                wp1=wp1, bp1=bp1, wp2=wp2, bp2=bp2)


def reference(x1, x2, m1, m2, params, num_heads, mask_threshold=0.2):
    """Pure-JAX f32 reference mirroring the PyTorch forward (incl. attn2 bug)."""
    B_, N, C = x1.shape
    hd = C // num_heads
    scale = float(hd) ** (-0.5)

    def qkv(x, w, b):
        o = x @ w + b
        o = o.reshape(B_, N, 3, num_heads, hd).transpose(2, 0, 3, 1, 4)
        return o[0], o[1], o[2]

    q1, k1, v1 = qkv(x1, params["wqkv1"], params["bqkv1"])
    q2, k2, v2 = qkv(x2, params["wqkv2"], params["bqkv2"])
    rpb = params["rpb"][None]                                           # (1, H, N, N)

    a1 = (q1 * scale) @ jnp.swapaxes(k1, -2, -1) + rpb
    a1 = jax.nn.softmax(a1, axis=-1)
    a2 = jax.nn.softmax(a1, axis=-1)                                    # original bug

    y1 = (a1 @ v1).transpose(0, 2, 1, 3).reshape(B_, N, C) @ params["wp1"] + params["bp1"]
    y2 = (a2 @ v2).transpose(0, 2, 1, 3).reshape(B_, N, C) @ params["wp2"] + params["bp2"]
    y1m = y1 * m1[..., None]
    y2m = y2 * m2[..., None]
    o1 = jnp.where(m1[..., None] >= mask_threshold, y1m, y2m)
    o2 = jnp.where(m2[..., None] >= mask_threshold, y2m, y1m)
    return o1, o2


if __name__ == "__main__":
    dim = 32
    window_size = (4, 4)
    num_heads = 4
    B_ = 4                                 # num_windows * batch
    N = window_size[0] * window_size[1]

    key = jax.random.PRNGKey(0)
    k1, k2, k3, k4, kp = jax.random.split(key, 5)
    x1 = jax.random.normal(k1, (B_, N, dim), jnp.float32)
    x2 = jax.random.normal(k2, (B_, N, dim), jnp.float32)
    m1 = jax.random.uniform(k3, (B_, N), jnp.float32)
    m2 = jax.random.uniform(k4, (B_, N), jnp.float32)

    params = init_params(kp, dim, window_size, num_heads)

    o1, o2 = window_attention(x1, x2, m1, m2, params, num_heads=num_heads)
    jax.block_until_ready((o1, o2))

    r1, r2 = reference(x1, x2, m1, m2, params, num_heads)
    # bf16 MXU operands (f32 accumulation) + approximate EUP reciprocal in the
    # softmax denominators -> compare against the exact f32 reference at 2e-2.
    assert np.allclose(np.asarray(o1), np.asarray(r1), atol=2e-2, rtol=2e-2)
    assert np.allclose(np.asarray(o2), np.asarray(r2), atol=2e-2, rtol=2e-2)
    print("KERNEL_OK")
</pallas_src>

<mosaic_0001>
module attributes {stable_mosaic.version = 11 : i64} {
  func.func @window_attention_kernel(%arg0: i32, %arg1: memref<32x64xf32, #tpu.memory_space<vmem>>, %arg2: memref<32x2xf32, #tpu.memory_space<vmem>>, %arg3: memref<64x128xbf16, #tpu.memory_space<vmem>>, %arg4: memref<1x128xf32, #tpu.memory_space<vmem>>, %arg5: memref<64x64xbf16, #tpu.memory_space<vmem>>, %arg6: memref<1x64xf32, #tpu.memory_space<vmem>>, %arg7: memref<8x16x16xf32, #tpu.memory_space<vmem>>, %arg8: memref<32x64xf32, #tpu.memory_space<vmem>>) attributes {dimension_semantics = [#tpu.dimension_semantics<parallel>], iteration_bounds = array<i64: 2>, scalar_prefetch = 0 : i64, scratch_operands = 0 : i64, tpu.core_type = #tpu.core_type<tc>, window_params = [{transform_indices = @transform_0, window_bounds = array<i64: 32, 64>}, {transform_indices = @transform_1, window_bounds = array<i64: 32, 2>}, {pipeline_mode = #tpu.pipeline_mode<synchronous>, transform_indices = @transform_2, window_bounds = array<i64: 64, 128>}, {pipeline_mode = #tpu.pipeline_mode<synchronous>, transform_indices = @transform_3, window_bounds = array<i64: 1, 128>}, {pipeline_mode = #tpu.pipeline_mode<synchronous>, transform_indices = @transform_4, window_bounds = array<i64: 64, 64>}, {pipeline_mode = #tpu.pipeline_mode<synchronous>, transform_indices = @transform_5, window_bounds = array<i64: 1, 64>}, {pipeline_mode = #tpu.pipeline_mode<synchronous>, transform_indices = @transform_6, window_bounds = array<i64: 8, 16, 16>}, {transform_indices = @transform_7, window_bounds = array<i64: 32, 64>}]} {
    %c0 = arith.constant 0 : index
    %c0_0 = arith.constant 0 : index
    %0 = vector.load %arg1[%c0, %c0_0] : memref<32x64xf32, #tpu.memory_space<vmem>>, vector<32x64xf32>
    %1 = arith.truncf %0 : vector<32x64xf32> to vector<32x64xbf16>
    %c0_1 = arith.constant 0 : index
    %c0_2 = arith.constant 0 : index
    %2 = vector.load %arg3[%c0_1, %c0_2] : memref<64x128xbf16, #tpu.memory_space<vmem>>, vector<64x128xbf16>
    %cst = arith.constant dense<0.000000e+00> : vector<32x128xf32>
    %3 = tpu.matmul %1, %2, %cst {dimension_numbers = #tpu.dot_dimension_numbers<[1], [0], [0], [1], [0, 0, 1, 1], [], []>} : vector<32x64xbf16>, vector<64x128xbf16>, vector<32x128xf32> -> vector<32x128xf32>
    %c0_3 = arith.constant 0 : index
    %c0_4 = arith.constant 0 : index
    %4 = vector.load %arg4[%c0_3, %c0_4] : memref<1x128xf32, #tpu.memory_space<vmem>>, vector<1x128xf32>
    %5 = vector.broadcast %4 : vector<1x128xf32> to vector<32x128xf32>
    %6 = arith.addf %3, %5 : vector<32x128xf32>
    %7 = arith.truncf %6 : vector<32x128xf32> to vector<32x128xbf16>
    %8 = vector.extract_strided_slice %7 {offsets = [0, 0], sizes = [32, 8], strides = [1, 1]} : vector<32x128xbf16> to vector<32x8xbf16>
    %9 = vector.extract_strided_slice %7 {offsets = [0, 8], sizes = [32, 8], strides = [1, 1]} : vector<32x128xbf16> to vector<32x8xbf16>
    %10 = vector.extract_strided_slice %7 {offsets = [0, 16], sizes = [32, 8], strides = [1, 1]} : vector<32x128xbf16> to vector<32x8xbf16>
    %11 = vector.extract_strided_slice %7 {offsets = [0, 24], sizes = [32, 8], strides = [1, 1]} : vector<32x128xbf16> to vector<32x8xbf16>
    %12 = tpu.concatenate %8, %9, %10, %11 in 0 : vector<32x8xbf16>, vector<32x8xbf16>, vector<32x8xbf16>, vector<32x8xbf16> -> vector<128x8xbf16>
    %13 = vector.shape_cast %12 : vector<128x8xbf16> to vector<8x16x8xbf16>
    %14 = vector.extract_strided_slice %7 {offsets = [0, 32], sizes = [32, 8], strides = [1, 1]} : vector<32x128xbf16> to vector<32x8xbf16>
    %15 = vector.extract_strided_slice %7 {offsets = [0, 40], sizes = [32, 8], strides = [1, 1]} : vector<32x128xbf16> to vector<32x8xbf16>
    %16 = vector.extract_strided_slice %7 {offsets = [0, 48], sizes = [32, 8], strides = [1, 1]} : vector<32x128xbf16> to vector<32x8xbf16>
    %17 = vector.extract_strided_slice %7 {offsets = [0, 56], sizes = [32, 8], strides = [1, 1]} : vector<32x128xbf16> to vector<32x8xbf16>
    %18 = tpu.concatenate %14, %15, %16, %17 in 0 : vector<32x8xbf16>, vector<32x8xbf16>, vector<32x8xbf16>, vector<32x8xbf16> -> vector<128x8xbf16>
    %19 = vector.shape_cast %18 : vector<128x8xbf16> to vector<8x16x8xbf16>
    %20 = vector.extract_strided_slice %7 {offsets = [0, 64], sizes = [32, 8], strides = [1, 1]} : vector<32x128xbf16> to vector<32x8xbf16>
    %21 = vector.extract_strided_slice %7 {offsets = [0, 72], sizes = [32, 8], strides = [1, 1]} : vector<32x128xbf16> to vector<32x8xbf16>
    %22 = vector.extract_strided_slice %7 {offsets = [0, 80], sizes = [32, 8], strides = [1, 1]} : vector<32x128xbf16> to vector<32x8xbf16>
    %23 = vector.extract_strided_slice %7 {offsets = [0, 88], sizes = [32, 8], strides = [1, 1]} : vector<32x128xbf16> to vector<32x8xbf16>
    %24 = vector.extract_strided_slice %7 {offsets = [0, 96], sizes = [32, 8], strides = [1, 1]} : vector<32x128xbf16> to vector<32x8xbf16>
    %25 = vector.extract_strided_slice %7 {offsets = [0, 104], sizes = [32, 8], strides = [1, 1]} : vector<32x128xbf16> to vector<32x8xbf16>
    %26 = vector.extract_strided_slice %7 {offsets = [0, 112], sizes = [32, 8], strides = [1, 1]} : vector<32x128xbf16> to vector<32x8xbf16>
    %27 = vector.extract_strided_slice %7 {offsets = [0, 120], sizes = [32, 8], strides = [1, 1]} : vector<32x128xbf16> to vector<32x8xbf16>
    %28 = tpu.concatenate %20, %21, %22, %23, %24, %25, %26, %27 in 0 : vector<32x8xbf16>, vector<32x8xbf16>, vector<32x8xbf16>, vector<32x8xbf16>, vector<32x8xbf16>, vector<32x8xbf16>, vector<32x8xbf16>, vector<32x8xbf16> -> vector<256x8xbf16>
    %29 = vector.shape_cast %28 : vector<256x8xbf16> to vector<16x16x8xbf16>
    "tpu.trace_start"() <{level = 10 : i32, message = "gnd,gmd->gnm"}> : () -> ()
    %cst_5 = arith.constant dense<0.000000e+00> : vector<8x16x16xf32>
    %30 = tpu.matmul %13, %19, %cst_5 {dimension_numbers = #tpu.dot_dimension_numbers<[2], [2], [1], [1], [0, 0, 0, 1, 1, 1], [0], [0]>} : vector<8x16x8xbf16>, vector<8x16x8xbf16>, vector<8x16x16xf32> -> vector<8x16x16xf32>
    "tpu.trace_stop"() : () -> ()
    %c0_6 = arith.constant 0 : index
    %c0_7 = arith.constant 0 : index
    %c0_8 = arith.constant 0 : index
    %31 = vector.load %arg7[%c0_6, %c0_7, %c0_8] : memref<8x16x16xf32, #tpu.memory_space<vmem>>, vector<8x16x16xf32>
    %32 = arith.addf %30, %31 : vector<8x16x16xf32>
    %cst_9 = arith.constant dense<0xFF800000> : vector<8x16xf32>
    %33 = vector.multi_reduction <maximumf>, %32, %cst_9 [2] : vector<8x16x16xf32> to vector<8x16xf32>
    %34 = vector.shape_cast %33 : vector<8x16xf32> to vector<8x16x1xf32>
    %35 = vector.broadcast %34 : vector<8x16x1xf32> to vector<8x16x16xf32>
    %36 = arith.subf %32, %35 : vector<8x16x16xf32>
    %37 = math.exp %36 : vector<8x16x16xf32>
    %cst_10 = arith.constant dense<0.000000e+00> : vector<8x16xf32>
    %38 = vector.multi_reduction <add>, %37, %cst_10 [2] : vector<8x16x16xf32> to vector<8x16xf32>
    %39 = vector.shape_cast %38 : vector<8x16xf32> to vector<8x16x1xf32>
    %40 = tpu.reciprocal %39 {approx = true} : vector<8x16x1xf32> -> vector<8x16x1xf32>
    %41 = vector.broadcast %40 : vector<8x16x1xf32> to vector<8x16x16xf32>
    %42 = arith.mulf %37, %41 : vector<8x16x16xf32>
    %43 = math.exp %42 : vector<8x16x16xf32>
    %cst_11 = arith.constant dense<0.000000e+00> : vector<8x16xf32>
    %44 = vector.multi_reduction <add>, %43, %cst_11 [2] : vector<8x16x16xf32> to vector<8x16xf32>
    %45 = vector.shape_cast %44 : vector<8x16xf32> to vector<8x16x1xf32>
    %46 = tpu.reciprocal %45 {approx = true} : vector<8x16x1xf32> -> vector<8x16x1xf32>
    %47 = vector.broadcast %46 : vector<8x16x1xf32> to vector<8x16x16xf32>
    %48 = arith.mulf %43, %47 : vector<8x16x16xf32>
    %49 = tpu.concatenate %42, %48 in 0 : vector<8x16x16xf32>, vector<8x16x16xf32> -> vector<16x16x16xf32>
    %50 = arith.truncf %49 : vector<16x16x16xf32> to vector<16x16x16xbf16>
    "tpu.trace_start"() <{level = 10 : i32, message = "gnm,gmd->gnd"}> : () -> ()
    %cst_12 = arith.constant dense<0.000000e+00> : vector<16x16x8xf32>
    %51 = tpu.matmul %50, %29, %cst_12 {dimension_numbers = #tpu.dot_dimension_numbers<[2], [1], [1], [2], [0, 0, 0, 1, 1, 2], [0], [0]>} : vector<16x16x16xbf16>, vector<16x16x8xbf16>, vector<16x16x8xf32> -> vector<16x16x8xf32>
    "tpu.trace_stop"() : () -> ()
    %52 = vector.shape_cast %51 : vector<16x16x8xf32> to vector<256x8xf32>
    %53 = vector.extract_strided_slice %52 {offsets = [0, 0], sizes = [32, 8], strides = [1, 1]} : vector<256x8xf32> to vector<32x8xf32>
    %54 = vector.extract_strided_slice %52 {offsets = [32, 0], sizes = [32, 8], strides = [1, 1]} : vector<256x8xf32> to vector<32x8xf32>
    %55 = vector.extract_strided_slice %52 {offsets = [64, 0], sizes = [32, 8], strides = [1, 1]} : vector<256x8xf32> to vector<32x8xf32>
    %56 = vector.extract_strided_slice %52 {offsets = [96, 0], sizes = [32, 8], strides = [1, 1]} : vector<256x8xf32> to vector<32x8xf32>
    %57 = vector.extract_strided_slice %52 {offsets = [128, 0], sizes = [32, 8], strides = [1, 1]} : vector<256x8xf32> to vector<32x8xf32>
    %58 = vector.extract_strided_slice %52 {offsets = [160, 0], sizes = [32, 8], strides = [1, 1]} : vector<256x8xf32> to vector<32x8xf32>
    %59 = vector.extract_strided_slice %52 {offsets = [192, 0], sizes = [32, 8], strides = [1, 1]} : vector<256x8xf32> to vector<32x8xf32>
    %60 = vector.extract_strided_slice %52 {offsets = [224, 0], sizes = [32, 8], strides = [1, 1]} : vector<256x8xf32> to vector<32x8xf32>
    %61 = tpu.concatenate %53, %54, %55, %56, %57, %58, %59, %60 in 1 : vector<32x8xf32>, vector<32x8xf32>, vector<32x8xf32>, vector<32x8xf32>, vector<32x8xf32>, vector<32x8xf32>, vector<32x8xf32>, vector<32x8xf32> -> vector<32x64xf32>
    %62 = arith.truncf %61 : vector<32x64xf32> to vector<32x64xbf16>
    %c0_13 = arith.constant 0 : index
    %c0_14 = arith.constant 0 : index
    %63 = vector.load %arg5[%c0_13, %c0_14] : memref<64x64xbf16, #tpu.memory_space<vmem>>, vector<64x64xbf16>
    %cst_15 = arith.constant dense<0.000000e+00> : vector<32x64xf32>
    %64 = tpu.matmul %62, %63, %cst_15 {dimension_numbers = #tpu.dot_dimension_numbers<[1], [0], [0], [1], [0, 0, 1, 1], [], []>} : vector<32x64xbf16>, vector<64x64xbf16>, vector<32x64xf32> -> vector<32x64xf32>
    %c0_16 = arith.constant 0 : index
    %c0_17 = arith.constant 0 : index
    %65 = vector.load %arg6[%c0_16, %c0_17] : memref<1x64xf32, #tpu.memory_space<vmem>>, vector<1x64xf32>
    %66 = vector.broadcast %65 : vector<1x64xf32> to vector<32x64xf32>
    %67 = arith.addf %64, %66 : vector<32x64xf32>
    %c0_18 = arith.constant 0 : index
    %c0_19 = arith.constant 0 : index
    %68 = vector.load %arg2[%c0_18, %c0_19] : memref<32x2xf32, #tpu.memory_space<vmem>>, vector<32x1xf32>
    %c0_20 = arith.constant 0 : index
    %c1 = arith.constant 1 : index
    %69 = vector.load %arg2[%c0_20, %c1] : memref<32x2xf32, #tpu.memory_space<vmem>>, vector<32x1xf32>
    %70 = vector.extract_strided_slice %67 {offsets = [0, 0], sizes = [32, 32], strides = [1, 1]} : vector<32x64xf32> to vector<32x32xf32>
    %71 = vector.extract_strided_slice %67 {offsets = [0, 32], sizes = [32, 32], strides = [1, 1]} : vector<32x64xf32> to vector<32x32xf32>
    %72 = vector.broadcast %68 : vector<32x1xf32> to vector<32x32xf32>
    %73 = arith.mulf %70, %72 : vector<32x32xf32>
    %74 = vector.broadcast %69 : vector<32x1xf32> to vector<32x32xf32>
    %75 = arith.mulf %71, %74 : vector<32x32xf32>
    %cst_21 = arith.constant 2.000000e-01 : f32
    %76 = vector.broadcast %cst_21 : f32 to vector<32x1xf32>
    %77 = arith.cmpf oge, %68, %76 : vector<32x1xf32>
    %78 = vector.shape_cast %77 : vector<32x1xi1> to vector<32x1xi1>
    %79 = vector.broadcast %78 : vector<32x1xi1> to vector<32x32xi1>
    %80 = arith.select %79, %73, %75 : vector<32x32xi1>, vector<32x32xf32>
    %cst_22 = arith.constant 2.000000e-01 : f32
    %81 = vector.broadcast %cst_22 : f32 to vector<32x1xf32>
    %82 = arith.cmpf oge, %69, %81 : vector<32x1xf32>
    %83 = vector.shape_cast %82 : vector<32x1xi1> to vector<32x1xi1>
    %84 = vector.broadcast %83 : vector<32x1xi1> to vector<32x32xi1>
    %85 = arith.select %84, %75, %73 : vector<32x32xi1>, vector<32x32xf32>
    %86 = tpu.concatenate %80, %85 in 1 : vector<32x32xf32>, vector<32x32xf32> -> vector<32x64xf32>
    %c0_23 = arith.constant 0 : index
    %c0_24 = arith.constant 0 : index
    %87 = vector.load %arg8[%c0_23, %c0_24] : memref<32x64xf32, #tpu.memory_space<vmem>>, vector<32x64xf32>
    tpu.vector_store %arg8[%c0_23, %c0_24], %86 {strides = array<i32>} : memref<32x64xf32, #tpu.memory_space<vmem>>, vector<32x64xf32>,
    return
  }
  func.func @transform_0(%arg0: i32) -> (i32, i32) {
    %c0_i32 = arith.constant 0 : i32
    %c0_i32_0 = arith.constant 0 : i32
    return %arg0, %c0_i32 : i32, i32
  }
  func.func @transform_1(%arg0: i32) -> (i32, i32) {
    %c0_i32 = arith.constant 0 : i32
    %c0_i32_0 = arith.constant 0 : i32
    return %arg0, %c0_i32 : i32, i32
  }
  func.func @transform_2(%arg0: i32) -> (i32, i32) {
    %c0_i32 = arith.constant 0 : i32
    %c0_i32_0 = arith.constant 0 : i32
    %c0_i32_1 = arith.constant 0 : i32
    return %c0_i32, %c0_i32_0 : i32, i32
  }
  func.func @transform_3(%arg0: i32) -> (i32, i32) {
    %c0_i32 = arith.constant 0 : i32
    %c0_i32_0 = arith.constant 0 : i32
    %c0_i32_1 = arith.constant 0 : i32
    return %c0_i32, %c0_i32_0 : i32, i32
  }
  func.func @transform_4(%arg0: i32) -> (i32, i32) {
    %c0_i32 = arith.constant 0 : i32
    %c0_i32_0 = arith.constant 0 : i32
    %c0_i32_1 = arith.constant 0 : i32
    return %c0_i32, %c0_i32_0 : i32, i32
  }
  func.func @transform_5(%arg0: i32) -> (i32, i32) {
    %c0_i32 = arith.constant 0 : i32
    %c0_i32_0 = arith.constant 0 : i32
    %c0_i32_1 = arith.constant 0 : i32
    return %c0_i32, %c0_i32_0 : i32, i32
  }
  func.func @transform_6(%arg0: i32) -> (i32, i32, i32) {
    %c0_i32 = arith.constant 0 : i32
    %c0_i32_0 = arith.constant 0 : i32
    %c0_i32_1 = arith.constant 0 : i32
    %c0_i32_2 = arith.constant 0 : i32
    return %c0_i32, %c0_i32_0, %c0_i32_1 : i32, i32, i32
  }
  func.func @transform_7(%arg0: i32) -> (i32, i32) {
    %c0_i32 = arith.constant 0 : i32
    %c0_i32_0 = arith.constant 0 : i32
    return %arg0, %c0_i32 : i32, i32
  }
}

</mosaic_0001>

<bundles_post_ra>
// kernel: tpu_custom_call.1
= control target key start
LH: loop header
LB: loop body
LE: loop exit
PB: predicated region body
PF: predicated region fallthrough
CT: control target
= control target key end

     0   :  { %12 = vsyncpa [#allocation3], 0  ;;  %s3972_s0 = inlined_call_operand.vmem [shape: f32[64,64], index: 0, kind: input, shape index: {}]   ;;  %s3973_s1 = inlined_call_operand.vmem [shape: f32[64,2], index: 1, kind: input, shape index: {}]   ;;  %s3974_s2 = inlined_call_operand.hbm [shape: bf16[64,128], index: 2, kind: input, shape index: {}]   ;;  %s3975_s3 = inlined_call_operand.vmem [shape: f32[1,128], index: 3, kind: input, shape index: {}]   ;;  %s3976_s4 = inlined_call_operand.hbm [shape: bf16[64,64], index: 4, kind: input, shape index: {}]   ;;  %s3977_s5 = inlined_call_operand.vmem [shape: f32[1,64], index: 5, kind: input, shape index: {}]   ;;  %s3978_s6 = inlined_call_operand.hbm [shape: f32[8,16,16], index: 6, kind: input, shape index: {}]   ;;  %s3979_s7 = inlined_call_operand.hbm [shape: f32[64,64], index: 7, kind: output, shape index: {}]  }
   0x1   :  { %13 = vsyncpa [#allocation6], 0 }
   0x2   :  { %14 = vsyncpa [#allocation4], 0 }
   0x3   :  { %16 = vsyncpa [#allocation4 + $0x1], 0  ;;  %s3257_s24 = smov 0   ;;  %s3259_s25 = smov 0  }
   0x4   :  { %s3261_s26 = smov 0   ;;  %s3263_s27 = smov 0  }
   0x5 LB: > { %3986 = sst [smem:[#allocation12_spill]] %s3183_s26  ;;  %s3278_s28 = sadd.s32 4294967295, %s3187_s27   ;;  %s3187_s27 = sphi %s3263_s27, %s4001_s27   ;;  %s3183_s26 = sphi %s3261_s26, %s4006_s26   ;;  %s3179_s25 = sphi %s3259_s25, %s4005_s25   ;;  %s3175_s24 = sphi %s3257_s24, %s4004_s24  }
   0x6   : > { %s2438_s29 = sadd.s32 4294967294, %s3187_s27   ;;  %s3282_s30 = sadd.s32 1, %s3187_s27  }
   0x7   : > { %3987 = sst [smem:[#allocation13_spill]] %s3282_s30  ;;  %s186_s8 = sadd.s32 1, %s3183_s26 }
   0x8   : > { %s183_s9 = ssub.s32 %s3187_s27, %s3282_s30  ;;  %p196_p0 = scmp.ne.s32.totalorder %s3183_s26, %s3179_s25 }
   0x9   : > { %p184_p1 = scmp.eq.s32.totalorder %s183_s9, 0  ;;  %p197_p2 = scmp.eq.s32.totalorder %s3278_s28, 1 }
   0xa   : > { %p202_p3 = scmp.ne.s32.totalorder %s3179_s25, %s3175_s24  ;;  %p203_p4 = scmp.eq.s32.totalorder %s2438_s29, 1 }
   0xb   : > { %s3293_s10 = scalar_select %p184_p1, %s3183_s26, %s186_s8  }
   0xc   : > { %p3295_p5 = por %p197_p2, %p196_p0  ;;  %p3299_p6 = por %p203_p4, %p202_p3 }
   0xd   : > { %3988 = sst [smem:[#allocation14_spill]] %s3293_s10  ;;  %p2439_p7 = scmp.ge.s32.totalorder %s3187_s27, 1 }
   0xe   : > { %s3989_s11 = scalar_select %p3295_p5, 1, 0 }
   0xf   : > { %s3990_s12 = scalar_select %p3299_p6, 1, 0 }
  0x10   : > { %p210_p8 = scmp.lt.s32.totalorder %s3187_s27, 3  ;;  %p3980_p9 = scmp.eq.s32.totalorder %s3278_s28, 0 }
  0x11   : > { %s3189_s14 = smov [#allocation5]   ;;  %s3190_s17 = smov [#allocation2]  }
  0x12   : > { %p3306_p10 = pnand %p2439_p7, %p210_p8  ;;  %s238_s15 = sshll.u32 %s3189_s14, 4  ;;  %s3312_s15 = int_to_ptr.vmem [resolvable:$true] %s238_s15 }
  0x13   : > { %s222_s18 = sshll.u32 %s3190_s17, 4  ;;  %s3191_s19 = smov [#allocation7]   ;;  %s3320_s18 = int_to_ptr.vmem [resolvable:$true] %s222_s18 }
  0x14   : > { %s3991_s13 = scalar_select %p3306_p10, 1, 0 }
  0x15   : > { %p2739_p11 = pneg %p3306_p10  ;;  %s3322_s20 = sshll.u32 %s3191_s19, 4  ;;  %s255_s20 = int_to_ptr.vmem [resolvable:$true] %s3322_s20 }
  0x16   : > { %s3033_s23 = scalar_lea.hbm %s3976_s4, 512 }
  0x17   : > { %p3316_p12 = pnand %p3980_p9, %p2739_p11  ;;  %p3034_p13 = scmp.ne.s32.totalorder %s3976_s4, %s3033_s23 }
  0x18   : > { %p3040_p3 = scmp.lt.u32.totalorder %s3033_s23, %s3976_s4 }
  0x19   : > { %p3332_p0 = pneg %p3316_p12 }
  0x1b   : > { %p3036_p1 = pnand %p3332_p0, %p3034_p13 }
  0x1d   : > { %p3037_p2 = pneg %p3036_p1 }
  0x1f   : > { %p3042_p4 = pnand %p3040_p3, %p3037_p2 }
  0x21   : > { %3045 = shalt.err (!%p3042_p4)
}
  0x22   : > { %s3046_s19 = scalar_lea.vmem %s3312_s15, 512  ;;  %p3054_p9 = scmp.lt.s32.totalorder %s3312_s15, %s3312_s15 }
  0x23   : > { %p3047_p7 = scmp.ne.s32.totalorder %s3312_s15, %s3046_s19  ;;  %p3055_p6 = scmp.lt.s32.totalorder %s3046_s19, %s3046_s19 }
  0x25   : > { %p3049_p8 = pnand %p3047_p7, %p3332_p0  ;;  %p3056_p13 = por %p3055_p6, %p3054_p9 }
  0x27   : > { %p3050_p11 = pneg %p3049_p8 }
  0x29   : > { %p3057_p1 = pnand %p3056_p13, %p3050_p11 }
  0x2b   : > { %3060 = shalt.err (!%p3057_p1)
}
  0x2c   : > { %s3192_s21 = smov 64   ;;  %s3193_s22 = smov 4  }
  0x2d   : > { %2745 = dma.hbm_to_vmem [thread:$0]  (!%p3316_p12), %s3976_s4, 512, %s3312_s15, [#allocation6], %s3192_s21, %s3192_s21, %s3193_s22  }
  0x2e   : > { %s3061_s17 = scalar_lea.hbm %s3974_s2, 512 }
  0x2f   : > { %p3062_p6 = scmp.ne.s32.totalorder %s3974_s2, %s3061_s17  ;;  %p3068_p3 = scmp.lt.u32.totalorder %s3061_s17, %s3974_s2 }
  0x31   : > { %p3064_p9 = pnand %p3062_p6, %p3332_p0 }
  0x33   : > { %p3065_p2 = pneg %p3064_p9 }
  0x35   : > { %p3070_p4 = pnand %p3068_p3, %p3065_p2 }
  0x37   : > { %3073 = shalt.err (!%p3070_p4)
}
  0x38   : > { %s3074_s15 = scalar_lea.vmem %s3320_s18, 512  ;;  %p3082_p13 = scmp.lt.s32.totalorder %s3320_s18, %s3320_s18 }
  0x39   : > { %p3075_p7 = scmp.ne.s32.totalorder %s3320_s18, %s3074_s15  ;;  %p3083_p1 = scmp.lt.s32.totalorder %s3074_s15, %s3074_s15 }
  0x3b   : > { %p3077_p8 = pnand %p3075_p7, %p3332_p0  ;;  %p3084_p6 = por %p3083_p1, %p3082_p13 }
  0x3d   : > { %p3078_p11 = pneg %p3077_p8 }
  0x3f   : > { %p3085_p9 = pnand %p3084_p6, %p3078_p11 }
  0x41   : > { %3088 = shalt.err (!%p3085_p9)
}
  0x42   : > { %2742 = dma.hbm_to_vmem [thread:$0]  (!%p3316_p12), %s3974_s2, 512, %s3320_s18, [#allocation3], %s3192_s21, %s3192_s21, %s3193_s22  }
  0x43   : > { %s3089_s29 = scalar_lea.hbm %s3978_s6, 2048 }
  0x44   : > { %p3090_p2 = scmp.ne.s32.totalorder %s3978_s6, %s3089_s29  ;;  %p3096_p7 = scmp.lt.u32.totalorder %s3089_s29, %s3978_s6 }
  0x46   : > { %p3092_p3 = pnand %p3090_p2, %p3332_p0 }
  0x48   : > { %p3093_p4 = pneg %p3092_p3 }
  0x4a   : > { %p3098_p8 = pnand %p3096_p7, %p3093_p4 }
  0x4c   : > { %3101 = shalt.err (!%p3098_p8)
}
  0x4d   : > { %s3102_s15 = scalar_lea.vmem %s255_s20, 2048  ;;  %p3110_p6 = scmp.lt.s32.totalorder %s255_s20, %s255_s20 }
  0x4e   : > { %p3103_p11 = scmp.ne.s32.totalorder %s255_s20, %s3102_s15  ;;  %p3111_p9 = scmp.lt.s32.totalorder %s3102_s15, %s3102_s15 }
  0x50   : > { %p3105_p13 = pnand %p3103_p11, %p3332_p0  ;;  %p3112_p5 = por %p3111_p9, %p3110_p6 }
  0x52   : > { %p3106_p1 = pneg %p3105_p13 }
  0x54   : > { %p3113_p10 = pnand %p3112_p5, %p3106_p1 }
  0x56   : > { %3116 = shalt.err (!%p3113_p10)
}
  0x57   : > { %s3194_s18 = smov 128   ;;  %s3195_s21 = smov 8  }
  0x58   : > { %2748 = dma.hbm_to_vmem [thread:$0]  (!%p3316_p12), %s3978_s6, 2048, %s255_s20, [#allocation6], %s3194_s18, %s3194_s18, %s3195_s21  }
  0x59   : > { %p3994_p2 = scmp.ne.s32.totalorder %s3991_s13, 0 }
  0x5a   : > { %p3995_p3 = scmp.eq.s32.totalorder (!%p3994_p2), %s3278_s28, 0 }
  0x5b   : > { %288 = sbr.rel (%p3994_p2) target bundleno = 2046 (0x7fe), region = 48 }
  0x62   : > { %3162 = dma.done.wait (%p3995_p3), [#allocation3], 512   ;;  %p3996_p0 = pmov %p3995_p3 }
  0x64   : > { %3164 = vsyncadd (%p3996_p0), [#allocation3], 4294966784  ;;  %p3997_p5 = pmov %p3996_p0 }
  0x65   : > { %p3998_p10 = pmov %p3996_p0 }
  0x66   : > { %3166 = dma.done.wait (%p3997_p5), [#allocation6], 2560  }
  0x67   : > { %3168 = vsyncadd (%p3998_p10), [#allocation6], 4294964736  ;;  %s2449_s16 = sshll.u32 %s3278_s28, 2  ;;  %v2897_v0 = vld [vmem:[#allocation2] sm:$0xff]   ;;  %v2898_v1 = vld [vmem:[#allocation2 + $0x8] sm:$0xff]   ;;  %vm392_vm0 = vcmask 523264  }
  0x68   : > { %p334_p4 = scmp.lt.s32.totalorder %s2449_s16, 7  ;;  %2557 = vmatprep.subr.bf16.mxu0 %v2897_v0  ;;  %v2899_v2 = vld [vmem:[#allocation2 + $0x10] sm:$0xff]   ;;  %v2900_v6 = vld [vmem:[#allocation2 + $0x18] sm:$0xff]   ;;  %v2453_v11 = vld [vmem:[%s3975_s3] ss:$0 sm:$0xff]  ;;  %v3196_v21 = vmov 0.0  }
  0x69   : > { %2558 = vmatpush3.bf16.msra.mxu0 %v2897_v0  ;;  %2569 = vmatprep.subr.bf16.mxu1 %v3196_v21  ;;  %s3197_s29 = smov 112   ;;  %s3198_s8 = smov 120   ;;  %vm3199_vm1 = vmmov 0   ;;  %vm496_vm2 = vcmask 64512   ;;  %v480_v52 = vld [vmem:[#allocation7] sm:$0xff]  ;;  %v481_v54 = vld [vmem:[#allocation7 + $0x8] sm:$0xff] }
  0x6a   : > { %s4008_s16 = smov (!%p334_p4, %s2449_s16), 7  ;;  %2559 = vmatprep.subr.bf16.mxu0 %v2898_v1  ;;  %2571 = vmatprep.mubr.msk.bf16.mxu1 %vm3199_vm1, %v3196_v21  ;;  %s3200_s14 = smov 104   ;;  %vm885_vm3 = vcmask 130048   ;;  %v482_v62 = vld [vmem:[#allocation7 + $0x10] sm:$0xff]  ;;  %v483_v0 = vld [vmem:[#allocation7 + $0x18] sm:$0xff]  ;;  %vm2062_vm8 = vcmask 195584  }
  0x6b   : > { %s2450_s13 = sshll.u32 %s4008_s16, 3  ;;  %s3201_s17 = smov 96   ;;  %vm2067_vm9 = vcmask 261120   ;;  %vm2072_vm10 = vcmask 326656   ;;  %vm2077_vm11 = vcmask 392192   ;;  %vm2082_vm12 = vcmask 457728  }
  0x6c   : > { %s337_s30 = scalar_lea.vmem %s3972_s0, %s2450_s13  ;;  %s3202_s19 = smov 88  }
  0x6d   : > { %v347_v3 = vld [vmem:[%s337_s30] sm:$0xff]  ;;  %v348_v4 = vld [vmem:[%s337_s30 + $0x8] sm:$0xff]  ;;  %2560 = vmatpush3.bf16.msra.mxu0 %v2898_v1  ;;  %v349_v7 = vld [vmem:[%s337_s30 + $0x10] sm:$0xff]  ;;  %s3203_s15 = smov 72   ;;  %s3204_s18 = smov 80  }
  0x6e   : > { %v351_v5 = vpack.c.bf16 %v348_v4, %v347_v3  ;;  %2561 = vmatprep.subr.bf16.mxu0 %v2899_v2  ;;  %v350_v8 = vld [vmem:[%s337_s30 + $0x18] sm:$0xff]  ;;  %s3205_s21 = smov 64   ;;  %s3206_s22 = smov 8  }
  0x6f   : > { %v352_v9 = vpack.c.bf16 %v350_v8, %v349_v7  ;;  %v484_v8 = vld [vmem:[#allocation7 + $0x20] sm:$0xff]  ;;  %s3207_s26 = smov 16   ;;  %s3208_s20 = smov 24  }
  0x70   : > { %2565 = vmatprep.mubr.msk.bf16.mxu0 %vm392_vm0, %v351_v5  ;;  %s3209_s9 = smov 32   ;;  %s3210_s30 = smov 40  }
  0x71   : > { %2562 = vmatpush3.bf16.msra.mxu0 %v2899_v2  ;;  %s3211_s10 = smov 48   ;;  %s3212_s23 = smov 56  }
  0x72   : > { %2563 = vmatprep.subr.bf16.mxu0 %v2900_v6  ;;  %p3999_p7 = scmp.ne.s32.totalorder %s3989_s11, 0 }
  0x75   : > { %2564 = vmatpush3.bf16.msra.mxu0 %v2900_v6 }
  0x76   : > { %2593 = vmatprep.subr.bf16.mxu0 %v3196_v21 }
  0x78   : > { %2566 = vmatmul.mubr.msk.bf16.vlgmr.msra.gmra.mrb[0].mxu0 %vm392_vm0, %v352_v9 }
  0x79   : > { %2595 = vmatprep.mubr.msk.bf16.mxu0 %vm3199_vm1, %v3196_v21 }
 0x14b   : > { %v2567_v10 = vpop.f32.mrb[0].mxu0 }
 0x14c   : > { %v433_v12 = vpop.f32.mrb[1].mxu0  ;;  %v442_v14 = vadd.f32 %v2567_v10, %v2453_v11  ;;  %v485_v10 = vld [vmem:[#allocation7 + $0x28] sm:$0xff] }
 0x14d   : > { %v2568_v13 = vpop.f32.mrb[2].mxu0  ;;  %v434_v17 = vadd.f32 %v2453_v11, %v433_v12 }
 0x14e   : > { %v445_v15 = vadd.f32 %v2568_v13, %v2453_v11  ;;  %v436_v16 = vpop.f32.mrb[3].mxu0 }
 0x14f   : > { %v437_v18 = vadd.f32 %v2453_v11, %v436_v16 }
 0x150   : > { %v449_v19 = vpack.c.bf16 %v445_v15, %v442_v14  ;;  %v488_v14 = vld [vmem:[#allocation7 + $0x40] sm:$0xff] }
 0x151   : > { %v448_v20 = vpack.c.bf16 %v437_v18, %v434_v17 }
 0x153   : > { %456 = vrot.lane.b32.xlu1 %v448_v20, %s3197_s29  ;;  %452 = vrot.lane.b32.xlu0 %v448_v20, %s3198_s8 }
 0x157   : > { %458 = vrot.lane.b32.xlu1 %v449_v19, %s3197_s29  ;;  %454 = vrot.lane.b32.xlu0 %v449_v19, %s3198_s8 }
 0x15b   : > { %462 = vrot.lane.b32.xlu1 %v449_v19, %s3200_s14  ;;  %460 = vrot.lane.b32.xlu0 %v448_v20, %s3200_s14  ;;  %s343_s14 = scalar_lea.vmem %s3973_s1, %s2450_s13 }
 0x15f   : > { %466 = vrot.lane.b32.xlu1 %v449_v19, %s3201_s17  ;;  %464 = vrot.lane.b32.xlu0 %v448_v20, %s3201_s17 }
 0x1c5   : > { %v3427_v22 = vpop.permute.xlu1 %456  ;;  %v453_v23 = vpop.permute.xlu0 %452 }
 0x1c6   : > { %591 = vrot.lane.b32.xlu0 %v453_v23, %s3201_s17 }
 0x1c9   : > { %v3430_v24 = vpop.permute.xlu0 %454  ;;  %v3436_v25 = vpop.permute.xlu1 %458 }
 0x1ca   : > { %689 = vrot.lane.b32.xlu0 %v3427_v22, %s3201_s17  ;;  %640 = vrot.lane.b32.xlu1 %v3430_v24, %s3201_s17 }
 0x1cd   : > { %v3438_v26 = vpop.permute.xlu0 %460  ;;  %v3444_v27 = vpop.permute.xlu1 %462 }
 0x1ce   : > { %738 = vrot.lane.b32.xlu1 %v3436_v25, %s3201_s17  ;;  %787 = vrot.lane.b32.xlu0 %v3438_v26, %s3201_s17 }
 0x1d1   : > { %v3446_v28 = vpop.permute.xlu0 %464  ;;  %v3453_v30 = vpop.permute.xlu1 %466 }
 0x1d2   : > { %836 = vrot.lane.b32.xlu1 %v3444_v27, %s3201_s17  ;;  %470 = vrot.lane.b32.xlu0 %v449_v19, %s3202_s19  ;;  %v501_v29 = vsel %vm496_vm2, %v3446_v28, 0  ;;  %v548_v31 = vsel %vm496_vm2, %v3453_v30, 0 }
 0x1d3   : > { %2570 = vmatpush3.bf16.xpose.msra.mxu1 %v501_v29 }
 0x1d4   : > { %2575 = vmatprep.subr.bf16.mxu1 %v3196_v21 }
 0x1d6   : > { %468 = vrot.lane.b32.xlu1 %v448_v20, %s3202_s19  ;;  %476 = vrot.lane.b32.xlu0 %v448_v20, %s3203_s15 }
 0x1da   : > { %472 = vrot.lane.b32.xlu1 %v448_v20, %s3204_s18  ;;  %1190 = vrot.lane.b32.xlu0 %v448_v20, %s3205_s21 }
 0x1db   : > { %2572 = vmatmul.mubr.msk.bf16.vlgmr.msra.gmra.mrb[0].mxu1 %vm496_vm2, %v448_v20 }
 0x1dc   : > { %2576 = vmatpush3.bf16.xpose.msra.mxu1 %v548_v31  ;;  %2577 = vmatprep.mubr.msk.bf16.mxu1 %vm3199_vm1, %v3196_v21 }
 0x1dd   : > { %2581 = vmatprep.subr.bf16.mxu1 %v3196_v21 }
 0x1de   : > { %474 = vrot.lane.b32.xlu1 %v449_v19, %s3204_s18 }
 0x1e2   : > { %478 = vrot.lane.b32.xlu1 %v449_v19, %s3203_s15 }
 0x1e3   : > { %2578 = vmatmul.mubr.msk.bf16.vlgmr.msra.gmra.mrb[4].mxu1 %vm496_vm2, %v449_v19 }
 0x1e4   : > { %2583 = vmatprep.mubr.msk.bf16.mxu1 %vm3199_vm1, %v3196_v21 }
 0x1e6   : > { %1237 = vrot.lane.b32.xlu1 %v449_v19, %s3205_s21  ;;  %v489_v19 = vld [vmem:[#allocation7 + $0x48] sm:$0xff] }
 0x1ea   : > { %1284 = vrot.lane.b32.xlu1 %v453_v23, %s3205_s21 }
 0x238   : > { %v592_v32 = vpop.permute.xlu0 %591 }
 0x239   : > { %v597_v33 = vsel %vm496_vm2, %v592_v32, 0  ;;  %v486_v32 = vld [vmem:[#allocation7 + $0x30] sm:$0xff] }
 0x23a   : > { %2582 = vmatpush3.bf16.xpose.msra.mxu1 %v597_v33 }
 0x23b   : > { %2587 = vmatprep.subr.bf16.mxu1 %v3196_v21 }
 0x23c   : > { %v641_v34 = vpop.permute.xlu1 %640  ;;  %v690_v35 = vpop.permute.xlu0 %689 }
 0x23d   : > { %v695_v36 = vsel %vm496_vm2, %v690_v35, 0  ;;  %v646_v39 = vsel %vm496_vm2, %v641_v34, 0 }
 0x23e   : > { %2594 = vmatpush3.bf16.xpose.msra.mxu0 %v695_v36 }
 0x23f   : > { %2605 = vmatprep.subr.bf16.mxu0 %v3196_v21 }
 0x240   : > { %v739_v37 = vpop.permute.xlu1 %738  ;;  %v788_v38 = vpop.permute.xlu0 %787 }
 0x241   : > { %2584 = vmatmul.mubr.msk.bf16.vlgmr.msra.gmra.mrb[8].mxu1 %vm496_vm2, %v453_v23  ;;  %v793_v42 = vsel %vm496_vm2, %v788_v38, 0  ;;  %v744_v45 = vsel %vm496_vm2, %v739_v37, 0  ;;  %v487_v37 = vld [vmem:[#allocation7 + $0x38] sm:$0xff] }
 0x242   : > { %2588 = vmatpush3.bf16.xpose.msra.mxu1 %v646_v39  ;;  %2589 = vmatprep.mubr.msk.bf16.mxu1 %vm3199_vm1, %v3196_v21 }
 0x243   : > { %2599 = vmatprep.subr.bf16.mxu1 %v3196_v21 }
 0x244   : > { %v837_v40 = vpop.permute.xlu1 %836  ;;  %v3476_v41 = vpop.permute.xlu0 %470 }
 0x245   : > { %2596 = vmatmul.mubr.msk.bf16.vlgmr.msra.gmra.mrb[4].mxu0 %vm496_vm2, %v3427_v22  ;;  %v842_v49 = vsel %vm496_vm2, %v837_v40, 0 }
 0x246   : > { %2606 = vmatpush3.bf16.xpose.msra.mxu0 %v793_v42  ;;  %2607 = vmatprep.mubr.msk.bf16.mxu0 %vm3199_vm1, %v3196_v21 }
 0x247   : > { %2617 = vmatprep.subr.bf16.mxu0 %v3196_v21 }
 0x248   : > { %v3484_v43 = vpop.permute.xlu1 %468  ;;  %v3486_v44 = vpop.permute.xlu0 %476 }
 0x249   : > { %2590 = vmatmul.mubr.msk.bf16.vlgmr.msra.gmra.mrb[12].mxu1 %vm496_vm2, %v3430_v24 }
 0x24a   : > { %2600 = vmatpush3.bf16.xpose.msra.mxu1 %v744_v45  ;;  %2601 = vmatprep.mubr.msk.bf16.mxu1 %vm3199_vm1, %v3196_v21  ;;  %v492_v45 = vld [vmem:[#allocation7 + $0x60] sm:$0xff] }
 0x24b   : > { %2611 = vmatprep.subr.bf16.mxu1 %v3196_v21 }
 0x24c   : > { %v3494_v46 = vpop.permute.xlu1 %472  ;;  %v1191_v47 = vpop.permute.xlu0 %1190 }
 0x24d   : > { %2608 = vmatmul.mubr.msk.bf16.vlgmr.msra.gmra.mrb[8].mxu0 %vm496_vm2, %v3438_v26 }
 0x24e   : > { %2618 = vmatpush3.bf16.msra.mxu0 %v1191_v47  ;;  %2619 = vmatprep.mubr.msk.bf16.mxu0 %vm3199_vm1, %v3196_v21 }
 0x24f   : > { %2629 = vmatprep.subr.bf16.mxu0 %v3196_v21 }
 0x250   : > { %v3501_v48 = vpop.permute.xlu1 %474 }
 0x251   : > { %2602 = vmatmul.mubr.msk.bf16.vlgmr.msra.gmra.mrb[16].mxu1 %vm496_vm2, %v3436_v25 }
 0x252   : > { %2612 = vmatpush3.bf16.xpose.msra.mxu1 %v842_v49  ;;  %2613 = vmatprep.mubr.msk.bf16.mxu1 %vm3199_vm1, %v3196_v21 }
 0x253   : > { %2623 = vmatprep.subr.bf16.mxu1 %v3196_v21 }
 0x254   : > { %v3509_v50 = vpop.permute.xlu1 %478 }
 0x258   : > { %v1238_v51 = vpop.permute.xlu1 %1237 }
 0x259   : > { %2614 = vmatmul.mubr.msk.bf16.vlgmr.msra.gmra.mrb[20].mxu1 %vm496_vm2, %v3444_v27 }
 0x25a   : > { %2624 = vmatpush3.bf16.msra.mxu1 %v1238_v51  ;;  %2625 = vmatprep.mubr.msk.bf16.mxu1 %vm3199_vm1, %v3196_v21 }
 0x25b   : > { %2635 = vmatprep.subr.bf16.mxu1 %v3196_v21 }
 0x2ae   : > { %v537_v53 = vpop.f32.mrb[0].mxu1 }
 0x2af   : > { %v3516_v55 = vadd.f32 %v537_v53, %v480_v52  ;;  %v2573_v56 = vpop.f32.mrb[1].mxu1  ;;  %v493_v53 = vld [vmem:[#allocation7 + $0x68] sm:$0xff] }
 0x2b0   : > { %v540_v57 = vpop.f32.mrb[2].mxu1 }
 0x2b1   : > { %v3518_v58 = vadd.f32 %v540_v57, %v481_v54  ;;  %v2574_v59 = vpop.f32.mrb[3].mxu1  ;;  %v886_v60 = vsel %vm885_vm3, %v3516_v55, -inf }
 0x2b2   : > { %887 = vmax.xlane.f32.xlu0 %v886_v60  ;;  %v490_v60 = vld [vmem:[#allocation7 + $0x50] sm:$0xff] }
 0x2b3   : > { %v889_v61 = vsel %vm885_vm3, %v3518_v58, -inf }
 0x2b4   : > { %890 = vmax.xlane.f32.xlu1 %v889_v61 }
 0x2b6   : > { %v584_v63 = vpop.f32.mrb[4].mxu1 }
 0x2b7   : > { %v3524_v1 = vadd.f32 %v584_v63, %v482_v62  ;;  %v2579_v2 = vpop.f32.mrb[5].mxu1 }
 0x2b8   : > { %v587_v3 = vpop.f32.mrb[6].mxu1  ;;  %v491_v2 = vld [vmem:[#allocation7 + $0x58] sm:$0xff] }
 0x2b9   : > { %v3526_v4 = vadd.f32 %v587_v3, %v483_v0  ;;  %v2580_v5 = vpop.f32.mrb[7].mxu1  ;;  %v892_v6 = vsel %vm885_vm3, %v3524_v1, -inf }
 0x2ba   : > { %893 = vmax.xlane.f32.xlu0 %v892_v6 }
 0x2bb   : > { %v895_v7 = vsel %vm885_vm3, %v3526_v4, -inf }
 0x2be   : > { %896 = vmax.xlane.f32.xlu0 %v895_v7 }
 0x314   : > { %v633_v9 = vpop.f32.mrb[8].mxu1 }
 0x315   : > { %v3532_v11 = vadd.f32 %v633_v9, %v484_v8  ;;  %v2585_v12 = vpop.f32.mrb[9].mxu1 }
 0x316   : > { %v636_v13 = vpop.f32.mrb[10].mxu1 }
 0x317   : > { %v3534_v15 = vadd.f32 %v636_v13, %v485_v10  ;;  %v2586_v16 = vpop.f32.mrb[11].mxu1  ;;  %v898_v17 = vsel %vm885_vm3, %v3532_v11, -inf  ;;  %v494_v13 = vld [vmem:[#allocation7 + $0x70] sm:$0xff] }
 0x318   : > { %899 = vmax.xlane.f32.xlu1 %v898_v17  ;;  %v731_v18 = vpop.f32.mrb[4].mxu0  ;;  %v495_v16 = vld [vmem:[#allocation7 + $0x78] sm:$0xff] }
 0x319   : > { %v3538_v20 = vadd.f32 %v731_v18, %v488_v14  ;;  %v2597_v23 = vpop.f32.mrb[5].mxu0  ;;  %v901_v29 = vsel %vm885_vm3, %v3534_v15, -inf }
 0x31a   : > { %902 = vmax.xlane.f32.xlu0 %v901_v29  ;;  %v734_v31 = vpop.f32.mrb[6].mxu0 }
 0x31b   : > { %v3542_v33 = vadd.f32 %v734_v31, %v489_v19  ;;  %v2598_v34 = vpop.f32.mrb[7].mxu0  ;;  %v910_v35 = vsel %vm885_vm3, %v3538_v20, -inf }
 0x31c   : > { %v682_v36 = vpop.f32.mrb[12].mxu1  ;;  %911 = vmax.xlane.f32.xlu1 %v910_v35  ;;  %v3584_v35 = vpop.permute.xlu1 %1284 }
 0x31d   : > { %v3546_v38 = vadd.f32 %v682_v36, %v486_v32  ;;  %v2591_v39 = vpop.f32.mrb[13].mxu1  ;;  %v913_v40 = vsel %vm885_vm3, %v3542_v33, -inf }
 0x31e   : > { %v685_v42 = vpop.f32.mrb[14].mxu1  ;;  %914 = vmax.xlane.f32.xlu0 %v913_v40 }
 0x31f   : > { %v3550_v47 = vadd.f32 %v685_v42, %v487_v37  ;;  %v2592_v49 = vpop.f32.mrb[15].mxu1  ;;  %v904_v51 = vsel %vm885_vm3, %v3546_v38, -inf }
 0x320   : > { %905 = vmax.xlane.f32.xlu1 %v904_v51  ;;  %v829_v52 = vpop.f32.mrb[8].mxu0 }
 0x321   : > { %v3554_v54 = vadd.f32 %v829_v52, %v492_v45  ;;  %v2609_v56 = vpop.f32.mrb[9].mxu0  ;;  %v907_v57 = vsel %vm885_vm3, %v3550_v47, -inf }
 0x322   : > { %908 = vmax.xlane.f32.xlu0 %v907_v57  ;;  %v832_v59 = vpop.f32.mrb[10].mxu0 }
 0x323   : > { %v3558_v61 = vadd.f32 %v832_v59, %v493_v53  ;;  %v2610_v62 = vpop.f32.mrb[11].mxu0  ;;  %v922_v63 = vsel %vm885_vm3, %v3554_v54, -inf }
 0x324   : > { %v780_v0 = vpop.f32.mrb[16].mxu1  ;;  %923 = vmax.xlane.f32.xlu1 %v922_v63 }
 0x325   : > { %v3562_v3 = vadd.f32 %v780_v0, %v490_v60  ;;  %v2603_v5 = vpop.f32.mrb[17].mxu1  ;;  %v925_v6 = vsel %vm885_vm3, %v3558_v61, -inf }
 0x326   : > { %v783_v7 = vpop.f32.mrb[18].mxu1  ;;  %926 = vmax.xlane.f32.xlu0 %v925_v6 }
 0x327   : > { %v3566_v8 = vadd.f32 %v783_v7, %v491_v2  ;;  %v2604_v9 = vpop.f32.mrb[19].mxu1  ;;  %v916_v10 = vsel %vm885_vm3, %v3562_v3, -inf }
 0x328   : > { %917 = vmax.xlane.f32.xlu1 %v916_v10 }
 0x329   : > { %v919_v12 = vsel %vm885_vm3, %v3566_v8, -inf }
 0x32a   : > { %920 = vmax.xlane.f32.xlu0 %v919_v12 }
 0x32c   : > { %v878_v14 = vpop.f32.mrb[20].mxu1 }
 0x32d   : > { %v3572_v17 = vadd.f32 %v878_v14, %v494_v13  ;;  %v2615_v18 = vpop.f32.mrb[21].mxu1 }
 0x32e   : > { %v881_v19 = vpop.f32.mrb[22].mxu1 }
 0x32f   : > { %v3574_v23 = vadd.f32 %v881_v19, %v495_v16  ;;  %v2616_v29 = vpop.f32.mrb[23].mxu1  ;;  %v928_v31 = vsel %vm885_vm3, %v3572_v17, -inf }
 0x330   : > { %929 = vmax.xlane.f32.xlu1 %v928_v31 }
 0x331   : > { %v931_v32 = vsel %vm885_vm3, %v3574_v23, -inf }
 0x332   : > { %932 = vmax.xlane.f32.xlu0 %v931_v32 }
 0x33f   : > { %v888_v34 = vpop.xlane.xlu0 %887 }
 0x340   : > { %v934_v39 = vsub.f32 %v3516_v55, %v888_v34 }
 0x341   : > { %1378 = vrot.lane.b32.xlu1 %v3427_v22, %s3205_s21  ;;  %v891_v37 = vpop.xlane.xlu1 %890 }
 0x342   : > { %v935_v40 = vsub.f32 %v3518_v58, %v891_v37  ;;  %v950_v45 = vmul.f32 1.442695, %v934_v39 }
 0x344   : > { %v952_v51 = vmul.f32 1.442695, %v935_v40  ;;  %2905 = vpow2.f32 %v950_v45 }
 0x346   : > { %2907 = vpow2.f32 %v952_v51 }
 0x347   : > { %v894_v36 = vpop.xlane.xlu0 %893 }
 0x348   : > { %1331 = vrot.lane.b32.xlu0 %v3430_v24, %s3205_s21  ;;  %v936_v49 = vsub.f32 %v3524_v1, %v894_v36 }
 0x34a   : > { %v954_v22 = vmul.f32 1.442695, %v936_v49 }
 0x34b   : > { %v897_v42 = vpop.xlane.xlu0 %896 }
 0x34c   : > { %v937_v52 = vsub.f32 %v3526_v4, %v897_v42  ;;  %2909 = vpow2.f32 %v954_v22 }
 0x34e   : > { %v956_v53 = vmul.f32 1.442695, %v937_v52  ;;  %v3590_v24 = vpop.eup %2905 }
 0x34f   : > { %v982_v55 = vsel %vm885_vm3, %v3590_v24, 0.0 }
 0x350   : > { %2911 = vpow2.f32 %v956_v53  ;;  %v3592_v56 = vpop.eup %2907 }
 0x351   : > { %v985_v1 = vsel %vm885_vm3, %v3592_v56, 0.0 }
 0x356   : > { %v3596_v58 = vpop.eup %2909 }
 0x357   : > { %v988_v57 = vsel %vm885_vm3, %v3596_v58, 0.0 }
 0x35a   : > { %v3600_v4 = vpop.eup %2911 }
 0x35b   : > { %v991_v59 = vsel %vm885_vm3, %v3600_v4, 0.0 }
 0x365   : > { %983 = vadd.xlane.f32.xlu1 %v982_v55 }
 0x367   : > { %986 = vadd.xlane.f32.xlu0 %v985_v1 }
 0x369   : > { %989 = vadd.xlane.f32.xlu1 %v988_v57 }
 0x36b   : > { %992 = vadd.xlane.f32.xlu0 %v991_v59 }
 0x3a5   : > { %v900_v60 = vpop.xlane.xlu1 %899 }
 0x3a6   : > { %v938_v62 = vsub.f32 %v3532_v11, %v900_v60 }
 0x3a7   : > { %v903_v63 = vpop.xlane.xlu0 %902 }
 0x3a8   : > { %v958_v0 = vmul.f32 1.442695, %v938_v62  ;;  %v939_v2 = vsub.f32 %v3534_v15, %v903_v63 }
 0x3a9   : > { %v912_v5 = vpop.xlane.xlu1 %911 }
 0x3aa   : > { %2913 = vpow2.f32 %v958_v0  ;;  %v960_v6 = vmul.f32 1.442695, %v939_v2  ;;  %v942_v7 = vsub.f32 %v3538_v20, %v912_v5 }
 0x3ab   : > { %v915_v9 = vpop.xlane.xlu0 %914 }
 0x3ac   : > { %2915 = vpow2.f32 %v960_v6  ;;  %v966_v10 = vmul.f32 1.442695, %v942_v7  ;;  %v943_v12 = vsub.f32 %v3542_v33, %v915_v9 }
 0x3ad   : > { %v906_v13 = vpop.xlane.xlu1 %905 }
 0x3ae   : > { %2917 = vpow2.f32 %v966_v10  ;;  %v968_v14 = vmul.f32 1.442695, %v943_v12  ;;  %v940_v16 = vsub.f32 %v3546_v38, %v906_v13 }
 0x3af   : > { %v909_v11 = vpop.xlane.xlu0 %908 }
 0x3b0   : > { %2919 = vpow2.f32 %v968_v14  ;;  %v962_v18 = vmul.f32 1.442695, %v940_v16  ;;  %v941_v15 = vsub.f32 %v3550_v47, %v909_v11 }
 0x3b1   : > { %v924_v19 = vpop.xlane.xlu1 %923 }
 0x3b2   : > { %2921 = vpow2.f32 %v962_v18  ;;  %v964_v29 = vmul.f32 1.442695, %v941_v15  ;;  %v946_v20 = vsub.f32 %v3554_v54, %v924_v19 }
 0x3b3   : > { %v927_v31 = vpop.xlane.xlu0 %926 }
 0x3b4   : > { %v3613_v32 = vpop.eup %2913  ;;  %2923 = vpow2.f32 %v964_v29  ;;  %v974_v33 = vmul.f32 1.442695, %v946_v20  ;;  %v947_v34 = vsub.f32 %v3558_v61, %v927_v31 }
 0x3b5   : > { %v918_v36 = vpop.xlane.xlu1 %917  ;;  %v994_v38 = vsel %vm885_vm3, %v3613_v32, 0.0 }
 0x3b6   : > { %v3618_v37 = vpop.eup %2915  ;;  %2925 = vpow2.f32 %v974_v33  ;;  %v976_v47 = vmul.f32 1.442695, %v947_v34  ;;  %v944_v39 = vsub.f32 %v3562_v3, %v918_v36  ;;  %995 = vadd.xlane.f32.xlu1 %v994_v38 }
 0x3b7   : > { %v921_v40 = vpop.xlane.xlu0 %920  ;;  %v997_v54 = vsel %vm885_vm3, %v3618_v37, 0.0 }
 0x3b8   : > { %v3623_v42 = vpop.eup %2917  ;;  %2927 = vpow2.f32 %v976_v47  ;;  %v970_v45 = vmul.f32 1.442695, %v944_v39  ;;  %v945_v61 = vsub.f32 %v3566_v8, %v921_v40  ;;  %998 = vadd.xlane.f32.xlu0 %v997_v54 }
 0x3b9   : > { %v1006_v49 = vsel %vm885_vm3, %v3623_v42, 0.0 }
 0x3ba   : > { %v3628_v51 = vpop.eup %2919  ;;  %2929 = vpow2.f32 %v970_v45  ;;  %v972_v52 = vmul.f32 1.442695, %v945_v61  ;;  %1007 = vadd.xlane.f32.xlu1 %v1006_v49 }
 0x3bb   : > { %v1009_v3 = vsel %vm885_vm3, %v3628_v51, 0.0 }
 0x3bc   : > { %v3632_v22 = vpop.eup %2921  ;;  %2931 = vpow2.f32 %v972_v52  ;;  %1010 = vadd.xlane.f32.xlu0 %v1009_v3 }
 0x3bd   : > { %v1000_v53 = vsel %vm885_vm3, %v3632_v22, 0.0  ;;  %v930_v5 = vpop.xlane.xlu1 %929 }
 0x3be   : > { %v3636_v8 = vpop.eup %2923  ;;  %1001 = vadd.xlane.f32.xlu1 %v1000_v53  ;;  %v948_v7 = vsub.f32 %v3572_v17, %v930_v5 }
 0x3bf   : > { %v1003_v55 = vsel %vm885_vm3, %v3636_v8, 0.0  ;;  %v933_v6 = vpop.xlane.xlu0 %932 }
 0x3c0   : > { %v3640_v1 = vpop.eup %2925  ;;  %1004 = vadd.xlane.f32.xlu0 %v1003_v55  ;;  %v949_v9 = vsub.f32 %v3574_v23, %v933_v6  ;;  %v978_v10 = vmul.f32 1.442695, %v948_v7 }
 0x3c1   : > { %v1018_v57 = vsel %vm885_vm3, %v3640_v1, 0.0  ;;  %v3662_v13 = vpop.permute.xlu1 %1378 }
 0x3c2   : > { %v3644_v59 = vpop.eup %2927  ;;  %1019 = vadd.xlane.f32.xlu1 %v1018_v57  ;;  %v980_v12 = vmul.f32 1.442695, %v949_v9  ;;  %2933 = vpow2.f32 %v978_v10 }
 0x3c3   : > { %v1021_v60 = vsel %vm885_vm3, %v3644_v59, 0.0  ;;  %v1332_v14 = vpop.permute.xlu0 %1331 }
 0x3c4   : > { %v3648_v62 = vpop.eup %2929  ;;  %1022 = vadd.xlane.f32.xlu0 %v1021_v60  ;;  %2935 = vpow2.f32 %v980_v12 }
 0x3c5   : > { %v1012_v63 = vsel %vm885_vm3, %v3648_v62, 0.0 }
 0x3c6   : > { %v3652_v0 = vpop.eup %2931  ;;  %1013 = vadd.xlane.f32.xlu1 %v1012_v63 }
 0x3c7   : > { %v1015_v2 = vsel %vm885_vm3, %v3652_v0, 0.0 }
 0x3c8   : > { %1016 = vadd.xlane.f32.xlu0 %v1015_v2 }
 0x3cc   : > { %v3664_v18 = vpop.eup %2933 }
 0x3cd   : > { %v1024_v17 = vsel %vm885_vm3, %v3664_v18, 0.0 }
 0x3ce   : > { %v3666_v15 = vpop.eup %2935 }
 0x3cf   : > { %v1027_v23 = vsel %vm885_vm3, %v3666_v15, 0.0 }
 0x3d7   : > { %1472 = vrot.lane.b32.xlu1 %v3438_v26, %s3205_s21 }
 0x3de   : > { %1425 = vrot.lane.b32.xlu0 %v3436_v25, %s3205_s21 }
 0x3f2   : > { %v984_v16 = vpop.xlane.xlu1 %983 }
 0x3f3   : > { %2937 = vrcp.f32 %v984_v16 }
 0x3f4   : > { %v987_v11 = vpop.xlane.xlu0 %986 }
 0x3f5   : > { %2939 = vrcp.f32 %v987_v11 }
 0x3f6   : > { %v990_v26 = vpop.xlane.xlu1 %989 }
 0x3f7   : > { %2941 = vrcp.f32 %v990_v26 }
 0x3f8   : > { %v993_v25 = vpop.xlane.xlu0 %992 }
 0x3f9   : > { %2943 = vrcp.f32 %v993_v25 }
 0x3fb   : > { %1025 = vadd.xlane.f32.xlu1 %v1024_v17 }
 0x3fd   : > { %v2938_v19 = vpop.eup %2937  ;;  %1028 = vadd.xlane.f32.xlu0 %v1027_v23 }
 0x3fe   : > { %v1046_v20 = vmul.f32 %v2938_v19, %v3590_v24 }
 0x3ff   : > { %v2940_v29 = vpop.eup %2939 }
 0x400   : > { %v1047_v31 = vmul.f32 %v2940_v29, %v3592_v56 }
 0x401   : > { %v2942_v33 = vpop.eup %2941 }
 0x402   : > { %v1174_v34 = vpack.c.bf16 %v1047_v31, %v1046_v20  ;;  %v1048_v38 = vmul.f32 %v2942_v33, %v3596_v58 }
 0x403   : > { %v2944_v36 = vpop.eup %2943 }
 0x404   : > { %v1049_v47 = vmul.f32 %v2944_v36, %v3600_v4  ;;  %2620 = vmatmul.mubr.msk.bf16.vlgmr.msra.gmra.mrb[12].mxu0 %vm885_vm3, %v1174_v34  ;;  %v1066_v24 = vmul.f32 1.442695, %v1048_v38 }
 0x405   : > { %2630 = vmatpush3.bf16.msra.mxu0 %v3584_v35  ;;  %2631 = vmatprep.mubr.msk.bf16.mxu0 %vm3199_vm1, %v3196_v21  ;;  %v1062_v35 = vmul.f32 1.442695, %v1046_v20 }
 0x406   : > { %v1175_v39 = vpack.c.bf16 %v1049_v47, %v1048_v38  ;;  %2641 = vmatprep.subr.bf16.mxu0 %v3196_v21 }
 0x407   : > { %2945 = vpow2.f32 %v1062_v35 }
 0x408   : > { %2626 = vmatmul.mubr.msk.bf16.vlgmr.msra.gmra.mrb[24].mxu1 %vm885_vm3, %v1175_v39 }
 0x409   : > { %2636 = vmatpush3.bf16.msra.mxu1 %v1332_v14  ;;  %2637 = vmatprep.mubr.msk.bf16.mxu1 %vm3199_vm1, %v3196_v21 }
 0x40a   : > { %2647 = vmatprep.subr.bf16.mxu1 %v3196_v21 }
 0x40c   : > { %1566 = vrot.lane.b32.xlu1 %v3446_v28, %s3205_s21  ;;  %v1064_v28 = vmul.f32 1.442695, %v1047_v31 }
 0x40e   : > { %2947 = vpow2.f32 %v1064_v28 }
 0x40f   : > { %2949 = vpow2.f32 %v1066_v24 }
 0x410   : > { %1660 = vrot.lane.b32.xlu1 %v3484_v43, %s3205_s21  ;;  %v1068_v43 = vmul.f32 1.442695, %v1049_v47 }
 0x412   : > { %2951 = vpow2.f32 %v1068_v43 }
 0x413   : > { %1519 = vrot.lane.b32.xlu0 %v3444_v27, %s3205_s21  ;;  %v3699_v27 = vpop.eup %2945 }
 0x414   : > { %1707 = vrot.lane.b32.xlu1 %v3476_v41, %s3205_s21 }
 0x417   : > { %1613 = vrot.lane.b32.xlu0 %v3453_v30, %s3205_s21  ;;  %v1094_v30 = vsel %vm885_vm3, %v3699_v27, 0.0 }
 0x418   : > { %1801 = vrot.lane.b32.xlu1 %v3501_v48, %s3205_s21  ;;  %v3701_v41 = vpop.eup %2947 }
 0x419   : > { %v3705_v56 = vpop.eup %2949 }
 0x41a   : > { %v1100_v48 = vsel %vm885_vm3, %v3705_v56, 0.0 }
 0x41b   : > { %1754 = vrot.lane.b32.xlu0 %v3494_v46, %s3205_s21  ;;  %v1097_v46 = vsel %vm885_vm3, %v3701_v41, 0.0 }
 0x41c   : > { %v3711_v58 = vpop.eup %2951 }
 0x41d   : > { %v1103_v4 = vsel %vm885_vm3, %v3711_v58, 0.0 }
 0x43a   : > { %1095 = vadd.xlane.f32.xlu0 %v1094_v30 }
 0x43c   : > { %1098 = vadd.xlane.f32.xlu1 %v1097_v46 }
 0x43e   : > { %1101 = vadd.xlane.f32.xlu0 %v1100_v48 }
 0x442   : > { %1104 = vadd.xlane.f32.xlu0 %v1103_v4 }
 0x443   : > { %v996_v40 = vpop.xlane.xlu1 %995 }
 0x444   : > { %2953 = vrcp.f32 %v996_v40 }
 0x445   : > { %v999_v54 = vpop.xlane.xlu0 %998 }
 0x446   : > { %2955 = vrcp.f32 %v999_v54 }
 0x447   : > { %v1008_v45 = vpop.xlane.xlu1 %1007 }
 0x448   : > { %2957 = vrcp.f32 %v1008_v45 }
 0x449   : > { %v1011_v61 = vpop.xlane.xlu0 %1010 }
 0x44a   : > { %2959 = vrcp.f32 %v1011_v61 }
 0x44b   : > { %v1002_v49 = vpop.xlane.xlu1 %1001 }
 0x44c   : > { %2961 = vrcp.f32 %v1002_v49 }
 0x44d   : > { %v1005_v52 = vpop.xlane.xlu0 %1004 }
 0x44e   : > { %v2954_v3 = vpop.eup %2953  ;;  %2963 = vrcp.f32 %v1005_v52 }
 0x44f   : > { %v1050_v53 = vmul.f32 %v2954_v3, %v3613_v32  ;;  %v1020_v55 = vpop.xlane.xlu1 %1019 }
 0x450   : > { %v2956_v57 = vpop.eup %2955  ;;  %2965 = vrcp.f32 %v1020_v55 }
 0x451   : > { %v1051_v60 = vmul.f32 %v2956_v57, %v3618_v37  ;;  %v1023_v63 = vpop.xlane.xlu0 %1022  ;;  %v1070_v2 = vmul.f32 1.442695, %v1050_v53 }
 0x452   : > { %v2958_v5 = vpop.eup %2957  ;;  %2967 = vrcp.f32 %v1023_v63 }
 0x453   : > { %v1054_v6 = vmul.f32 %v2958_v5, %v3623_v42  ;;  %v1014_v7 = vpop.xlane.xlu1 %1013  ;;  %v1176_v9 = vpack.c.bf16 %v1051_v60, %v1050_v53  ;;  %2969 = vpow2.f32 %v1070_v2  ;;  %v1072_v10 = vmul.f32 1.442695, %v1051_v60 }
 0x454   : > { %v2960_v12 = vpop.eup %2959  ;;  %2971 = vrcp.f32 %v1014_v7 }
 0x455   : > { %v1055_v14 = vmul.f32 %v2960_v12, %v3628_v51  ;;  %2632 = vmatmul.mubr.msk.bf16.vlgmr.msra.gmra.mrb[16].mxu0 %vm885_vm3, %v1176_v9  ;;  %v1017_v32 = vpop.xlane.xlu0 %1016  ;;  %2973 = vpow2.f32 %v1072_v10  ;;  %v1078_v16 = vmul.f32 1.442695, %v1054_v6 }
 0x456   : > { %v2962_v37 = vpop.eup %2961  ;;  %2642 = vmatpush3.bf16.msra.mxu0 %v3662_v13  ;;  %2975 = vrcp.f32 %v1017_v32  ;;  %2643 = vmatprep.mubr.msk.bf16.mxu0 %vm3199_vm1, %v3196_v21 }
 0x457   : > { %v1052_v42 = vmul.f32 %v2962_v37, %v3632_v22  ;;  %2653 = vmatprep.subr.bf16.mxu0 %v3196_v21  ;;  %2977 = vpow2.f32 %v1078_v16  ;;  %v1080_v11 = vmul.f32 1.442695, %v1055_v14  ;;  %v1178_v23 = vpack.c.bf16 %v1055_v14, %v1054_v6  ;;  %v1473_v33 = vpop.permute.xlu1 %1472 }
 0x458   : > { %v2964_v26 = vpop.eup %2963 }
 0x459   : > { %v1053_v51 = vmul.f32 %v2964_v26, %v3636_v8  ;;  %2979 = vpow2.f32 %v1080_v11  ;;  %v1074_v25 = vmul.f32 1.442695, %v1052_v42  ;;  %v1426_v34 = vpop.permute.xlu0 %1425 }
 0x45a   : > { %v2966_v17 = vpop.eup %2965 }
 0x45b   : > { %v1058_v19 = vmul.f32 %v2966_v17, %v3640_v1  ;;  %v1177_v13 = vpack.c.bf16 %v1053_v51, %v1052_v42  ;;  %2981 = vpow2.f32 %v1074_v25  ;;  %v1076_v29 = vmul.f32 1.442695, %v1053_v51 }
 0x45c   : > { %v2968_v20 = vpop.eup %2967 }
 0x45d   : > { %v3727_v31 = vpop.eup %2969  ;;  %v1059_v22 = vmul.f32 %v2968_v20, %v3644_v59  ;;  %2638 = vmatmul.mubr.msk.bf16.vlgmr.msra.gmra.mrb[28].mxu1 %vm885_vm3, %v1177_v13  ;;  %2644 = vmatmul.mubr.msk.bf16.vlgmr.msra.gmra.mrb[20].mxu0 %vm885_vm3, %v1178_v23  ;;  %2983 = vpow2.f32 %v1076_v29  ;;  %v1086_v8 = vmul.f32 1.442695, %v1058_v19 }
 0x45e   : > { %v2972_v36 = vpop.eup %2971  ;;  %2648 = vmatpush3.bf16.msra.mxu1 %v1426_v34  ;;  %2654 = vmatpush3.bf16.msra.mxu0 %v1473_v33  ;;  %v1106_v1 = vsel %vm885_vm3, %v3727_v31, 0.0 }
 0x45f   : > { %v3734_v38 = vpop.eup %2973  ;;  %v1056_v47 = vmul.f32 %v2972_v36, %v3648_v62  ;;  %1107 = vadd.xlane.f32.xlu1 %v1106_v1  ;;  %2649 = vmatprep.mubr.msk.bf16.mxu1 %vm3199_vm1, %v3196_v21  ;;  %2985 = vpow2.f32 %v1086_v8  ;;  %v1088_v59 = vmul.f32 1.442695, %v1059_v22  ;;  %v1180_v40 = vpack.c.bf16 %v1059_v22, %v1058_v19 }
 0x460   : > { %v2976_v39 = vpop.eup %2975  ;;  %v1109_v35 = vsel %vm885_vm3, %v3734_v38, 0.0  ;;  %2655 = vmatprep.mubr.msk.bf16.mxu0 %vm3199_vm1, %v3196_v21  ;;  %2665 = vmatprep.subr.bf16.mxu0 %v3196_v21 }
 0x461   : > { %v3744_v28 = vpop.eup %2977  ;;  %v1057_v24 = vmul.f32 %v2976_v39, %v3652_v0  ;;  %1110 = vadd.xlane.f32.xlu0 %v1109_v35  ;;  %2987 = vpow2.f32 %v1088_v59  ;;  %v1082_v62 = vmul.f32 1.442695, %v1056_v47  ;;  %2659 = vmatprep.subr.bf16.mxu1 %v3196_v21 }
 0x462   : > { %v1118_v43 = vsel %vm885_vm3, %v3744_v28, 0.0 }
 0x463   : > { %v3750_v30 = vpop.eup %2979  ;;  %1119 = vadd.xlane.f32.xlu1 %v1118_v43  ;;  %v1179_v46 = vpack.c.bf16 %v1057_v24, %v1056_v47  ;;  %2989 = vpow2.f32 %v1082_v62  ;;  %v1084_v48 = vmul.f32 1.442695, %v1057_v24 }
 0x464   : > { %v1121_v4 = vsel %vm885_vm3, %v3750_v30, 0.0 }
 0x465   : > { %v3754_v54 = vpop.eup %2981  ;;  %1122 = vadd.xlane.f32.xlu0 %v1121_v4  ;;  %2650 = vmatmul.mubr.msk.bf16.vlgmr.msra.gmra.mrb[32].mxu1 %vm885_vm3, %v1179_v46  ;;  %2991 = vpow2.f32 %v1084_v48 }
 0x466   : > { %2656 = vmatmul.mubr.msk.bf16.vlgmr.msra.gmra.mrb[24].mxu0 %vm885_vm3, %v1180_v40  ;;  %v1112_v0 = vsel %vm885_vm3, %v3754_v54, 0.0  ;;  %2661 = vmatprep.mubr.msk.bf16.mxu1 %vm3199_vm1, %v3196_v21 }
 0x467   : > { %v3762_v45 = vpop.eup %2983  ;;  %1113 = vadd.xlane.f32.xlu1 %v1112_v0  ;;  %2667 = vmatprep.mubr.msk.bf16.mxu0 %vm3199_vm1, %v3196_v21 }
 0x468   : > { %v1115_v61 = vsel %vm885_vm3, %v3762_v45, 0.0 }
 0x469   : > { %v3768_v49 = vpop.eup %2985  ;;  %1116 = vadd.xlane.f32.xlu0 %v1115_v61 }
 0x46a   : > { %v1130_v52 = vsel %vm885_vm3, %v3768_v49, 0.0 }
 0x46b   : > { %v3772_v3 = vpop.eup %2987  ;;  %1131 = vadd.xlane.f32.xlu1 %v1130_v52 }
 0x46c   : > { %v1133_v53 = vsel %vm885_vm3, %v3772_v3, 0.0 }
 0x46d   : > { %v3776_v55 = vpop.eup %2989  ;;  %1134 = vadd.xlane.f32.xlu0 %v1133_v53 }
 0x46e   : > { %v1124_v57 = vsel %vm885_vm3, %v3776_v55, 0.0 }
 0x46f   : > { %v3780_v60 = vpop.eup %2991  ;;  %1125 = vadd.xlane.f32.xlu1 %v1124_v57 }
 0x470   : > { %v1127_v63 = vsel %vm885_vm3, %v3780_v60, 0.0 }
 0x471   : > { %1128 = vadd.xlane.f32.xlu0 %v1127_v63 }
 0x488   : > { %v1026_v2 = vpop.xlane.xlu1 %1025 }
 0x489   : > { %2993 = vrcp.f32 %v1026_v2 }
 0x48a   : > { %v1029_v5 = vpop.xlane.xlu0 %1028 }
 0x48b   : > { %2995 = vrcp.f32 %v1029_v5 }
 0x48c   : > { %v1567_v6 = vpop.permute.xlu1 %1566 }
 0x48d   : > { %2666 = vmatpush3.bf16.msra.mxu0 %v1567_v6 }
 0x48e   : > { %v1520_v7 = vpop.permute.xlu0 %1519  ;;  %2677 = vmatprep.subr.bf16.mxu0 %v3196_v21 }
 0x48f   : > { %2660 = vmatpush3.bf16.msra.mxu1 %v1520_v7 }
 0x490   : > { %2671 = vmatprep.subr.bf16.mxu1 %v3196_v21  ;;  %v1661_v51 = vpop.permute.xlu1 %1660 }
 0x492   : > { %v1614_v42 = vpop.permute.xlu0 %1613 }
 0x493   : > { %v2994_v9 = vpop.eup %2993 }
 0x494   : > { %v1060_v10 = vmul.f32 %v2994_v9, %v3664_v18  ;;  %v1708_v25 = vpop.permute.xlu1 %1707 }
 0x495   : > { %v2996_v12 = vpop.eup %2995 }
 0x496   : > { %v1061_v14 = vmul.f32 %v2996_v12, %v3666_v15  ;;  %v1090_v32 = vmul.f32 1.442695, %v1060_v10  ;;  %v1755_v17 = vpop.permute.xlu0 %1754 }
 0x498   : > { %v1181_v16 = vpack.c.bf16 %v1061_v14, %v1060_v10  ;;  %2997 = vpow2.f32 %v1090_v32  ;;  %v1092_v37 = vmul.f32 1.442695, %v1061_v14  ;;  %v3804_v23 = vpop.permute.xlu1 %1801 }
 0x49a   : > { %2662 = vmatmul.mubr.msk.bf16.vlgmr.msra.gmra.mrb[36].mxu1 %vm885_vm3, %v1181_v16  ;;  %2999 = vpow2.f32 %v1092_v37 }
 0x49b   : > { %2672 = vmatpush3.bf16.msra.mxu1 %v1614_v42  ;;  %2673 = vmatprep.mubr.msk.bf16.mxu1 %vm3199_vm1, %v3196_v21 }
 0x49c   : > { %2683 = vmatprep.subr.bf16.mxu1 %v3196_v21 }
 0x4a2   : > { %v3792_v11 = vpop.eup %2997 }
 0x4a3   : > { %v1136_v18 = vsel %vm885_vm3, %v3792_v11, 0.0 }
 0x4a4   : > { %v3796_v15 = vpop.eup %2999  ;;  %1137 = vadd.xlane.f32.xlu1 %v1136_v18 }
 0x4a5   : > { %v1139_v26 = vsel %vm885_vm3, %v3796_v15, 0.0 }
 0x4a6   : > { %1140 = vadd.xlane.f32.xlu0 %v1139_v26 }
 0x4b5   : > { %1895 = vrot.lane.b32.xlu1 %v3509_v50, %s3205_s21 }
 0x4bc   : > { %1848 = vrot.lane.b32.xlu0 %v3486_v44, %s3205_s21  ;;  %s2496_s21 = sshll.u32 %s3278_s28, 9 }
 0x4c7   : > { %v1096_v19 = vpop.xlane.xlu0 %1095 }
 0x4c8   : > { %3001 = vrcp.f32 %v1096_v19 }
 0x4c9   : > { %v1099_v13 = vpop.xlane.xlu1 %1098 }
 0x4ca   : > { %3003 = vrcp.f32 %v1099_v13 }
 0x4cb   : > { %v1102_v29 = vpop.xlane.xlu0 %1101 }
 0x4cc   : > { %3005 = vrcp.f32 %v1102_v29 }
 0x4cf   : > { %v1105_v20 = vpop.xlane.xlu0 %1104 }
 0x4d0   : > { %3007 = vrcp.f32 %v1105_v20 }
 0x4d2   : > { %v3002_v22 = vpop.eup %3001 }
 0x4d3   : > { %v1158_v50 = vmul.f32 %v3002_v22, %v3699_v27 }
 0x4d4   : > { %v3004_v33 = vpop.eup %3003 }
 0x4d5   : > { %v1159_v34 = vmul.f32 %v3004_v33, %v3701_v41 }
 0x4d6   : > { %v3006_v36 = vpop.eup %3005 }
 0x4d7   : > { %v3808_v8 = vpop.f32.mrb[12].mxu0  ;;  %v1182_v44 = vpack.c.bf16 %v1159_v34, %v1158_v50  ;;  %v1160_v35 = vmul.f32 %v3006_v36, %v3705_v56 }
 0x4d8   : > { %v2621_v1 = vpop.f32.mrb[13].mxu0 }
 0x4d9   : > { %v3810_v47 = vpop.f32.mrb[14].mxu0  ;;  %2668 = vmatmul.mubr.msk.bf16.vlgmr.msra.gmra.mrb[28].mxu0 %vm885_vm3, %v1182_v44 }
 0x4da   : > { %v3008_v59 = vpop.eup %3007  ;;  %2678 = vmatpush3.bf16.msra.mxu0 %v1661_v51  ;;  %v2622_v39 = vpop.f32.mrb[15].mxu0  ;;  %2679 = vmatprep.mubr.msk.bf16.mxu0 %vm3199_vm1, %v3196_v21 }
 0x4db   : > { %v1161_v27 = vmul.f32 %v3008_v59, %v3711_v58  ;;  %v3817_v41 = vpop.f32.mrb[24].mxu1  ;;  %2689 = vmatprep.subr.bf16.mxu0 %v3196_v21 }
 0x4dc   : > { %v2627_v24 = vpop.f32.mrb[25].mxu1 }
 0x4dd   : > { %v3820_v62 = vpop.f32.mrb[26].mxu1  ;;  %v1183_v43 = vpack.c.bf16 %v1161_v27, %v1160_v35 }
 0x4de   : > { %v2628_v46 = vpop.f32.mrb[27].mxu1 }
 0x4df   : > { %2674 = vmatmul.mubr.msk.bf16.vlgmr.msra.gmra.mrb[40].mxu1 %vm885_vm3, %v1183_v43 }
 0x4e0   : > { %2684 = vmatpush3.bf16.msra.mxu1 %v1708_v25  ;;  %2685 = vmatprep.mubr.msk.bf16.mxu1 %vm3199_vm1, %v3196_v21 }
 0x4e1   : > { %2695 = vmatprep.subr.bf16.mxu1 %v3196_v21 }
 0x4ec   : > { %v1108_v56 = vpop.xlane.xlu1 %1107 }
 0x4ed   : > { %3009 = vrcp.f32 %v1108_v56 }
 0x4ee   : > { %v1111_v58 = vpop.xlane.xlu0 %1110 }
 0x4ef   : > { %3011 = vrcp.f32 %v1111_v58 }
 0x4f0   : > { %v1120_v48 = vpop.xlane.xlu1 %1119 }
 0x4f2   : > { %v1123_v4 = vpop.xlane.xlu0 %1122 }
 0x4f3   : > { %3013 = vrcp.f32 %v1123_v4 }
 0x4f4   : > { %3015 = vrcp.f32 %v1120_v48  ;;  %v1114_v40 = vpop.xlane.xlu1 %1113 }
 0x4f5   : > { %3017 = vrcp.f32 %v1114_v40 }
 0x4f6   : > { %v1117_v0 = vpop.xlane.xlu0 %1116 }
 0x4f7   : > { %v3010_v61 = vpop.eup %3009  ;;  %3019 = vrcp.f32 %v1117_v0 }
 0x4f8   : > { %v1132_v52 = vpop.xlane.xlu1 %1131  ;;  %v1162_v57 = vmul.f32 %v3010_v61, %v3727_v31 }
 0x4f9   : > { %v3012_v53 = vpop.eup %3011 }
 0x4fa   : > { %v1163_v63 = vmul.f32 %v3012_v53, %v3734_v38  ;;  %v1135_v2 = vpop.xlane.xlu0 %1134 }
 0x4fc   : > { %v1126_v5 = vpop.xlane.xlu1 %1125  ;;  %v1184_v6 = vpack.c.bf16 %v1163_v63, %v1162_v57 }
 0x4fd   : > { %v3014_v7 = vpop.eup %3013  ;;  %3021 = vrcp.f32 %v1126_v5 }
 0x4fe   : > { %v3016_v9 = vpop.eup %3015  ;;  %2680 = vmatmul.mubr.msk.bf16.vlgmr.msra.gmra.mrb[32].mxu0 %vm885_vm3, %v1184_v6  ;;  %v1129_v10 = vpop.xlane.xlu0 %1128  ;;  %v1167_v14 = vmul.f32 %v3014_v7, %v3750_v30 }
 0x4ff   : > { %v3018_v12 = vpop.eup %3017  ;;  %2690 = vmatpush3.bf16.msra.mxu0 %v1755_v17  ;;  %3023 = vrcp.f32 %v1129_v10  ;;  %2691 = vmatprep.mubr.msk.bf16.mxu0 %vm3199_vm1, %v3196_v21  ;;  %v1166_v38 = vmul.f32 %v3016_v9, %v3744_v28 }
 0x500   : > { %2701 = vmatprep.subr.bf16.mxu0 %v3196_v21  ;;  %v1164_v32 = vmul.f32 %v3018_v12, %v3754_v54  ;;  %3025 = vrcp.f32 %v1135_v2 }
 0x501   : > { %v3020_v31 = vpop.eup %3019  ;;  %v1186_v42 = vpack.c.bf16 %v1167_v14, %v1166_v38  ;;  %3027 = vrcp.f32 %v1132_v52 }
 0x502   : > { %v1165_v16 = vmul.f32 %v3020_v31, %v3762_v45 }
 0x504   : > { %v1185_v37 = vpack.c.bf16 %v1165_v16, %v1164_v32 }
 0x506   : > { %2686 = vmatmul.mubr.msk.bf16.vlgmr.msra.gmra.mrb[44].mxu1 %vm885_vm3, %v1185_v37  ;;  %2692 = vmatmul.mubr.msk.bf16.vlgmr.msra.gmra.mrb[36].mxu0 %vm885_vm3, %v1186_v42 }
 0x507   : > { %v3022_v18 = vpop.eup %3021  ;;  %2696 = vmatpush3.bf16.msra.mxu1 %v3804_v23  ;;  %2697 = vmatprep.mubr.msk.bf16.mxu1 %vm3199_vm1, %v3196_v21 }
 0x508   : > { %2707 = vmatprep.subr.bf16.mxu1 %v3196_v21  ;;  %2703 = vmatprep.mubr.msk.bf16.mxu0 %vm3199_vm1, %v3196_v21  ;;  %v1168_v30 = vmul.f32 %v3022_v18, %v3776_v55 }
 0x509   : > { %v3024_v28 = vpop.eup %3023 }
 0x50a   : > { %v1169_v54 = vmul.f32 %v3024_v28, %v3780_v60  ;;  %v3026_v22 = vpop.eup %3025 }
 0x50b   : > { %v3028_v1 = vpop.eup %3027  ;;  %v1171_v39 = vmul.f32 %v3026_v22, %v3772_v3 }
 0x50c   : > { %v1187_v45 = vpack.c.bf16 %v1169_v54, %v1168_v30  ;;  %v1170_v35 = vmul.f32 %v3028_v1, %v3768_v49 }
 0x50e   : > { %2698 = vmatmul.mubr.msk.bf16.vlgmr.msra.gmra.mrb[48].mxu1 %vm885_vm3, %v1187_v45  ;;  %v1188_v48 = vpack.c.bf16 %v1171_v39, %v1170_v35 }
 0x50f   : > { %2709 = vmatprep.mubr.msk.bf16.mxu1 %vm3199_vm1, %v3196_v21 }
 0x528   : > { %v1324_v26 = vpop.f32.mrb[16].mxu0 }
 0x529   : > { %v2633_v51 = vpop.f32.mrb[17].mxu0 }
 0x52a   : > { %v1327_v25 = vpop.f32.mrb[18].mxu0 }
 0x52b   : > { %v2819_v17 = vpack.i.bf16 %v1327_v25, %v1324_v26  ;;  %v2634_v23 = vpop.f32.mrb[19].mxu0 }
 0x52d   : > { %2820 = vrot.lane.b32.xlu0 %v2819_v17, %s3206_s22 }
 0x530   : > { %v1371_v19 = vpop.f32.mrb[28].mxu1  ;;  %v1418_v55 = vpop.f32.mrb[20].mxu0 }
 0x531   : > { %v1138_v13 = vpop.xlane.xlu1 %1137  ;;  %v2639_v60 = vpop.f32.mrb[29].mxu1 }
 0x532   : > { %v2645_v29 = vpop.f32.mrb[21].mxu0  ;;  %v1374_v20 = vpop.f32.mrb[30].mxu1  ;;  %3029 = vrcp.f32 %v1138_v13 }
 0x533   : > { %v2824_v33 = vpack.i.bf16 %v1374_v20, %v1371_v19  ;;  %v1421_v21 = vpop.f32.mrb[22].mxu0  ;;  %v2640_v50 = vpop.f32.mrb[31].mxu1  ;;  %v2901_v19 = vld [vmem:[#allocation5] sm:$0xff]  }
 0x534   : > { %v2829_v34 = vpack.i.bf16 %v1421_v21, %v1418_v55  ;;  %v2646_v44 = vpop.f32.mrb[23].mxu0  ;;  %v1141_v36 = vpop.xlane.xlu0 %1140 }
 0x535   : > { %3031 = vrcp.f32 %v1141_v36  ;;  %v1896_v59 = vpop.permute.xlu1 %1895  ;;  %2825 = vrot.lane.b32.xlu1 %v2824_v33, %s3206_s22  ;;  %v2903_v44 = vld [vmem:[#allocation5 + $0x10] sm:$0xff]   ;;  %v2904_v36 = vld [vmem:[#allocation5 + $0x18] sm:$0xff]  }
 0x536   : > { %2830 = vrot.lane.b32.xlu0 %v2829_v34, %s3207_s26  ;;  %2708 = vmatpush3.bf16.msra.mxu1 %v1896_v59  ;;  %v2902_v34 = vld [vmem:[#allocation5 + $0x8] sm:$0xff]  }
 0x538   : > { %v1849_v27 = vpop.permute.xlu0 %1848  ;;  %v1465_v24 = vpop.f32.mrb[32].mxu1 }
 0x539   : > { %v1512_v43 = vpop.f32.mrb[24].mxu0  ;;  %2702 = vmatpush3.bf16.msra.mxu0 %v1849_v27  ;;  %v2651_v46 = vpop.f32.mrb[33].mxu1 }
 0x53a   : > { %v2657_v56 = vpop.f32.mrb[25].mxu0  ;;  %v1468_v58 = vpop.f32.mrb[34].mxu1  ;;  %2713 = vmatprep.subr.bf16.mxu0 %v2901_v19  ;;  %v2183_v46 = vld [vmem:[%s343_s14] sm:$0xff] }
 0x53b   : > { %v2834_v4 = vpack.i.bf16 %v1468_v58, %v1465_v24  ;;  %v1515_v40 = vpop.f32.mrb[26].mxu0  ;;  %v2652_v0 = vpop.f32.mrb[35].mxu1  ;;  %v3213_v24 = vmov 0   ;;  %vm2231_vm4 = vcmp.ge.f32.partialorder %v2183_v46, 0.2 }
 0x53c   : > { %v2839_v61 = vpack.i.bf16 %v1515_v40, %v1512_v43  ;;  %v2658_v52 = vpop.f32.mrb[27].mxu0  ;;  %2704 = vmatmul.mubr.msk.bf16.vlgmr.msra.gmra.mrb[40].mxu0 %vm885_vm3, %v1188_v48  ;;  %v3030_v3 = vpop.eup %3029  ;;  %2890 = vset.pattern.permute.xlu1 %v3213_v24  ;;  %v2186_v40 = vld [vmem:[%s343_s14 + $0x18] sm:$0xff]  ;;  %v2184_v0 = vld [vmem:[%s343_s14 + $0x8] sm:$0xff] }
 0x53d   : > { %2835 = vrot.lane.b32.xlu1 %v2834_v4, %s3207_s26  ;;  %v1172_v53 = vmul.f32 %v3030_v3, %v3792_v11  ;;  %2714 = vmatpush3.bf16.msra.mxu0 %v2901_v19  ;;  %v2185_v52 = vld [vmem:[%s343_s14 + $0x10] sm:$0xff]  ;;  %vm2234_vm5 = vcmp.ge.f32.partialorder %v2186_v40, 0.2  ;;  %v2235_v3 = vsel %vm2231_vm4, 1, %v3213_v24  ;;  %vm2232_vm6 = vcmp.ge.f32.partialorder %v2184_v0, 0.2 }
 0x53e   : > { %2840 = vrot.lane.b32.xlu0 %v2839_v61, %s3208_s20  ;;  %2715 = vmatprep.subr.bf16.mxu0 %v2902_v34  ;;  %v3214_v61 = vmov 1   ;;  %vm2233_vm7 = vcmp.ge.f32.partialorder %v2185_v52, 0.2 }
 0x53f   : > { %v3032_v49 = vpop.eup %3031  ;;  %2889 = vset.pattern.permute.xlu0 %v3213_v24 }
 0x540   : > { %v1173_v57 = vmul.f32 %v3032_v49, %v3796_v15  ;;  %v2238_v49 = vsel %vm2234_vm5, 1, %v3213_v24 }
 0x541   : > { %2716 = vmatpush3.bf16.msra.mxu0 %v2902_v34 }
 0x542   : > { %v1189_v63 = vpack.c.bf16 %v1173_v57, %v1172_v53  ;;  %2717 = vmatprep.subr.bf16.mxu0 %v2903_v44  ;;  %v2236_v53 = vsel %vm2232_vm6, 1, %v3213_v24  ;;  %v2237_v57 = vsel %vm2233_vm7, 1, %v3213_v24 }
 0x544   : > { %2710 = vmatmul.mubr.msk.bf16.vlgmr.msra.gmra.mrb[52].mxu1 %vm885_vm3, %v1189_v63 }
 0x545   : > { %2718 = vmatpush3.bf16.msra.mxu0 %v2903_v44 }
 0x546   : > { %2719 = vmatprep.subr.bf16.mxu0 %v2904_v36 }
 0x549   : > { %2720 = vmatpush3.bf16.msra.mxu0 %v2904_v36 }
 0x56d   : > { %v1559_v2 = vpop.f32.mrb[36].mxu1 }
 0x56e   : > { %v2663_v5 = vpop.f32.mrb[37].mxu1 }
 0x56f   : > { %v1562_v6 = vpop.f32.mrb[38].mxu1 }
 0x570   : > { %v2844_v7 = vpack.i.bf16 %v1562_v6, %v1559_v2  ;;  %v2664_v9 = vpop.f32.mrb[39].mxu1 }
 0x572   : > { %2845 = vrot.lane.b32.xlu1 %v2844_v7, %s3208_s20  ;;  %s3924_s20 = scalar_lea.hbm %s3979_s7, %s2496_s21 }
 0x59f   : > { %v2821_v63 = vpop.permute.xlu0 %2820 }
 0x5a7   : > { %v2826_v5 = vpop.permute.xlu1 %2825 }
 0x5a8   : > { %v2831_v2 = vpop.permute.xlu0 %2830 }
 0x5ac   : > { %v1606_v10 = vpop.f32.mrb[28].mxu0 }
 0x5ad   : > { %v2669_v12 = vpop.f32.mrb[29].mxu0 }
 0x5ae   : > { %v1609_v14 = vpop.f32.mrb[30].mxu0 }
 0x5af   : > { %v2849_v31 = vpack.i.bf16 %v1609_v14, %v1606_v10  ;;  %v2670_v38 = vpop.f32.mrb[31].mxu0  ;;  %v2836_v7 = vpop.permute.xlu1 %2835  ;;  %v2822_v14 = vunpack.i.l.bf16 %v2821_v63 }
 0x5b0   : > { %v2841_v6 = vpop.permute.xlu0 %2840  ;;  %v2832_v38 = vunpack.i.l.bf16 %v2831_v2  ;;  %v2837_v34 = vunpack.i.l.bf16 %v2836_v7 }
 0x5b1   : > { %2850 = vrot.lane.b32.xlu0 %v2849_v31, %s3209_s9  ;;  %v2823_v31 = vunpack.i.h.bf16 %v2821_v63 }
 0x5b2   : > { %v1653_v11 = vpop.f32.mrb[40].mxu1 }
 0x5b3   : > { %v2675_v32 = vpop.f32.mrb[41].mxu1 }
 0x5b4   : > { %v1656_v15 = vpop.f32.mrb[42].mxu1  ;;  %v2843_v32 = vunpack.i.h.bf16 %v2841_v6 }
 0x5b5   : > { %v2854_v16 = vpack.i.bf16 %v1656_v15, %v1653_v11  ;;  %v2676_v37 = vpop.f32.mrb[43].mxu1  ;;  %v2833_v11 = vunpack.i.h.bf16 %v2831_v2  ;;  %v2842_v15 = vunpack.i.l.bf16 %v2841_v6 }
 0x5b7   : > { %2855 = vrot.lane.b32.xlu1 %v2854_v16, %s3209_s9 }
 0x5d1   : > { %v1700_v42 = vpop.f32.mrb[32].mxu0 }
 0x5d2   : > { %v2681_v18 = vpop.f32.mrb[33].mxu0 }
 0x5d3   : > { %v1703_v28 = vpop.f32.mrb[34].mxu0 }
 0x5d4   : > { %v2859_v30 = vpack.i.bf16 %v1703_v28, %v1700_v42  ;;  %v2682_v54 = vpop.f32.mrb[35].mxu0  ;;  %v2054_v42 = vsel %vm496_vm2, %v3808_v8, %v2822_v14 }
 0x5d5   : > { %v2058_v54 = vsel %vm885_vm3, %v2054_v42, %v2832_v38 }
 0x5d6   : > { %2860 = vrot.lane.b32.xlu0 %v2859_v30, %s3210_s30  ;;  %v2055_v30 = vsel %vm496_vm2, %v3810_v47, %v2823_v31  ;;  %v2063_v19 = vsel %vm2062_vm8, %v2058_v54, %v2842_v15  ;;  %v2484_v15 = vld [vmem:[%s3977_s5] ss:$0 sm:$0xff] }
 0x5d9   : > { %v1747_v45 = vpop.f32.mrb[44].mxu1  ;;  %v1794_v26 = vpop.f32.mrb[36].mxu0 }
 0x5da   : > { %v2687_v51 = vpop.f32.mrb[45].mxu1  ;;  %v2693_v25 = vpop.f32.mrb[37].mxu0 }
 0x5db   : > { %v1750_v17 = vpop.f32.mrb[46].mxu1  ;;  %v1797_v23 = vpop.f32.mrb[38].mxu0  ;;  %v2059_v51 = vsel %vm885_vm3, %v2055_v30, %v2833_v11 }
 0x5dc   : > { %v2864_v55 = vpack.i.bf16 %v1750_v17, %v1747_v45  ;;  %v2869_v13 = vpack.i.bf16 %v1797_v23, %v1794_v26  ;;  %v2688_v60 = vpop.f32.mrb[47].mxu1  ;;  %v2694_v29 = vpop.f32.mrb[39].mxu0  ;;  %v2828_v23 = vunpack.i.h.bf16 %v2826_v5  ;;  %v2064_v8 = vsel %vm2062_vm8, %v2059_v51, %v2843_v32 }
 0x5de   : > { %2870 = vrot.lane.b32.xlu0 %v2869_v13, %s3211_s10  ;;  %2865 = vrot.lane.b32.xlu1 %v2864_v55, %s3210_s30  ;;  %v2827_v13 = vunpack.i.l.bf16 %v2826_v5 }
 0x5e1   : > { %v1841_v20 = vpop.f32.mrb[48].mxu1 }
 0x5e2   : > { %v2699_v22 = vpop.f32.mrb[49].mxu1 }
 0x5e3   : > { %v1844_v33 = vpop.f32.mrb[50].mxu1 }
 0x5e4   : > { %v2874_v21 = vpack.i.bf16 %v1844_v33, %v1841_v20  ;;  %v2700_v50 = vpop.f32.mrb[51].mxu1  ;;  %v2846_v10 = vpop.permute.xlu1 %2845 }
 0x5e5   : > { %v2838_v50 = vunpack.i.h.bf16 %v2836_v7 }
 0x5e6   : > { %2875 = vrot.lane.b32.xlu1 %v2874_v21, %s3211_s10  ;;  %s3215_s10 = smov [#allocation8]  }
 0x60f   : > { %v1888_v1 = vpop.f32.mrb[40].mxu0 }
 0x610   : > { %v2705_v59 = vpop.f32.mrb[41].mxu0 }
 0x611   : > { %v1891_v39 = vpop.f32.mrb[42].mxu0  ;;  %v2847_v59 = vunpack.i.l.bf16 %v2846_v10 }
 0x612   : > { %v2879_v35 = vpack.i.bf16 %v1891_v39, %v1888_v1  ;;  %v2706_v27 = vpop.f32.mrb[43].mxu0  ;;  %v2848_v1 = vunpack.i.h.bf16 %v2846_v10 }
 0x614   : > { %2880 = vrot.lane.b32.xlu0 %v2879_v35, %s3212_s23 }
 0x617   : > { %v1935_v43 = vpop.f32.mrb[52].mxu1 }
 0x618   : > { %v2711_v56 = vpop.f32.mrb[53].mxu1  ;;  %2189 = vperm.xlu0 %2889, %v2183_v46  }
 0x619   : > { %v1938_v58 = vpop.f32.mrb[54].mxu1  ;;  %v2057_v56 = vsel %vm496_vm2, %v3820_v62, %v2828_v23 }
 0x61a   : > { %v2884_v48 = vpack.i.bf16 %v1938_v58, %v1935_v43  ;;  %v2712_v4 = vpop.f32.mrb[55].mxu1  ;;  %v2056_v58 = vsel %vm496_vm2, %v3817_v41, %v2827_v13 }
 0x61c   : > { %2885 = vrot.lane.b32.xlu1 %v2884_v48, %s3212_s23  ;;  %2204 = vperm.xlu0 %2889, %v2186_v40   ;;  %s3121_s23 = sshll.u32 %s3215_s10, 4  ;;  %s3122_s23 = int_to_ptr.vmem [resolvable:$false] %s3121_s23 }
 0x61d   : > { %s3123_s29 = scalar_lea.vmem %s3122_s23, 1024 }
 0x620   : > { %2194 = vperm.xlu1 %2890, %v2184_v0   ;;  %2892 = vset.pattern.permute.xlu0 %v3214_v61 }
 0x621   : > { %2216 = vperm.xlu0 %2892, %v2184_v0   ;;  %v2060_v0 = vsel %vm885_vm3, %v2056_v58, %v2837_v34 }
 0x623   : > { %v2851_v9 = vpop.permute.xlu0 %2850 }
 0x624   : > { %2199 = vperm.xlu1 %2890, %v2185_v52   ;;  %v2853_v18 = vunpack.i.h.bf16 %v2851_v9  ;;  %v2852_v28 = vunpack.i.l.bf16 %v2851_v9 }
 0x625   : > { %2893 = vset.pattern.permute.xlu0 %v3213_v24 }
 0x626   : > { %2240 = vperm.xlu0 %2893, %v2235_v3   ;;  %v2068_v60 = vsel %vm2067_vm9, %v2063_v19, %v2852_v28  ;;  %v2069_v47 = vsel %vm2067_vm9, %v2064_v8, %v2853_v18 }
 0x628   : > { %2891 = vset.pattern.permute.xlu1 %v3214_v61 }
 0x629   : > { %2212 = vperm.xlu1 %2891, %v2183_v46   ;;  %v2856_v16 = vpop.permute.xlu1 %2855 }
 0x62a   : > { %2249 = vperm.xlu0 %2893, %v2238_v49   ;;  %v2857_v43 = vunpack.i.l.bf16 %v2856_v16 }
 0x62d   : > { %2220 = vperm.xlu1 %2891, %v2185_v52  }
 0x62e   : > { %2896 = vset.pattern.permute.xlu0 %v3214_v61 }
 0x62f   : > { %2279 = vperm.xlu0 %2896, %v2236_v53  }
 0x631   : > { %2224 = vperm.xlu1 %2891, %v2186_v40   ;;  %v2061_v40 = vsel %vm885_vm3, %v2057_v56, %v2838_v50 }
 0x635   : > { %2894 = vset.pattern.permute.xlu1 %v3213_v24  ;;  %v2858_v24 = vunpack.i.h.bf16 %v2856_v16 }
 0x636   : > { %2243 = vperm.xlu1 %2894, %v2236_v53  }
 0x63a   : > { %2246 = vperm.xlu1 %2894, %v2237_v57  }
 0x63e   : > { %2895 = vset.pattern.permute.xlu1 %v3214_v61 }
 0x63f   : > { %2276 = vperm.xlu1 %2895, %v2235_v3   ;;  %v2066_v3 = vsel %vm2062_vm8, %v2061_v40, %v2848_v1 }
 0x640   : > { %v2071_v53 = vsel %vm2067_vm9, %v2066_v3, %v2858_v24 }
 0x643   : > { %2282 = vperm.xlu1 %2895, %v2237_v57  }
 0x647   : > { %2285 = vperm.xlu1 %2895, %v2238_v49   ;;  %v2065_v49 = vsel %vm2062_vm8, %v2060_v0, %v2847_v59 }
 0x648   : > { %v2861_v12 = vpop.permute.xlu0 %2860  ;;  %v2070_v62 = vsel %vm2067_vm9, %v2065_v49, %v2857_v43 }
 0x649   : > { %v2863_v45 = vunpack.i.h.bf16 %v2861_v12  ;;  %v2862_v26 = vunpack.i.l.bf16 %v2861_v12 }
 0x64b   : > { %v2073_v20 = vsel %vm2072_vm10, %v2068_v60, %v2862_v26  ;;  %v2074_v22 = vsel %vm2072_vm10, %v2069_v47, %v2863_v45 }
 0x650   : > { %v2871_v37 = vpop.permute.xlu0 %2870  ;;  %v2866_v55 = vpop.permute.xlu1 %2865 }
 0x651   : > { %v2873_v25 = vunpack.i.h.bf16 %v2871_v37  ;;  %v2872_v17 = vunpack.i.l.bf16 %v2871_v37  ;;  %v2868_v48 = vunpack.i.h.bf16 %v2866_v55  ;;  %v2867_v4 = vunpack.i.l.bf16 %v2866_v55 }
 0x653   : > { %v2078_v44 = vsel %vm2077_vm11, %v2073_v20, %v2872_v17  ;;  %v2079_v36 = vsel %vm2077_vm11, %v2074_v22, %v2873_v25  ;;  %v2076_v41 = vsel %vm2072_vm10, %v2071_v53, %v2868_v48  ;;  %v2075_v63 = vsel %vm2072_vm10, %v2070_v62, %v2867_v4 }
 0x658   : > { %v2876_v39 = vpop.permute.xlu1 %2875 }
 0x659   : > { %v2878_v61 = vunpack.i.h.bf16 %v2876_v39  ;;  %v2877_v52 = vunpack.i.l.bf16 %v2876_v39 }
 0x65b   : > { %v2081_v6 = vsel %vm2077_vm11, %v2076_v41, %v2878_v61  ;;  %v2080_v7 = vsel %vm2077_vm11, %v2075_v63, %v2877_v52 }
 0x686   : > { %v2881_v29 = vpop.permute.xlu0 %2880 }
 0x687   : > { %v2883_v33 = vunpack.i.h.bf16 %v2881_v29  ;;  %v2882_v21 = vunpack.i.l.bf16 %v2881_v29 }
 0x689   : > { %v2083_v35 = vsel %vm2082_vm12, %v2078_v44, %v2882_v21  ;;  %v2084_v27 = vsel %vm2082_vm12, %v2079_v36, %v2883_v33 }
 0x68a   : > { %v2087_v46 = vpack.c.bf16 %v2084_v27, %v2083_v35 }
 0x68c   : > { %2721 = vmatprep.mubr.msk.bf16.mxu0 %vm392_vm0, %v2087_v46 }
 0x68e   : > { %v2886_v57 = vpop.permute.xlu1 %2885 }
 0x68f   : > { %v2888_v2 = vunpack.i.h.bf16 %v2886_v57  ;;  %v2887_v5 = vunpack.i.l.bf16 %v2886_v57 }
 0x691   : > { %v2086_v9 = vsel %vm2082_vm12, %v2081_v6, %v2888_v2  ;;  %v2085_v10 = vsel %vm2082_vm12, %v2080_v7, %v2887_v5 }
 0x692   : > { %v2088_v12 = vpack.c.bf16 %v2086_v9, %v2085_v10 }
 0x694   : > { %2722 = vmatmul.mubr.msk.bf16.vlgmr.msra.gmra.mrb[44].mxu0 %vm392_vm0, %v2088_v12 }
 0x697   : > { %v2190_v11 = vpop.permute.xlu0 %2189 }
 0x69b   : > { %v2205_v18 = vpop.permute.xlu0 %2204 }
 0x69f   : > { %v2195_v14 = vpop.permute.xlu1 %2194 }
 0x6a0   : > { %v2217_v23 = vpop.permute.xlu0 %2216 }
 0x6a3   : > { %v2200_v31 = vpop.permute.xlu1 %2199 }
 0x6a5   : > { %v2241_v22 = vpop.permute.xlu0 %2240 }
 0x6a6   : > { %vm2251_vm14 = vcmp.eq.s32.totalorder %v2241_v22, 1 }
 0x6a8   : > { %v2213_v38 = vpop.permute.xlu1 %2212 }
 0x6a9   : > { %v2250_v21 = vpop.permute.xlu0 %2249 }
 0x6aa   : > { %vm2254_vm4 = vcmp.eq.s32.totalorder %v2250_v21, 1 }
 0x6ac   : > { %v2221_v32 = vpop.permute.xlu1 %2220 }
 0x6ae   : > { %v2280_v34 = vpop.permute.xlu0 %2279 }
 0x6af   : > { %vm2288_vm1 = vcmp.eq.s32.totalorder %v2280_v34, 1 }
 0x6b0   : > { %v2225_v51 = vpop.permute.xlu1 %2224 }
 0x6b5   : > { %v2244_v29 = vpop.permute.xlu1 %2243 }
 0x6b6   : > { %vm2252_vm15 = vcmp.eq.s32.totalorder %v2244_v29, 1 }
 0x6b9   : > { %v2247_v20 = vpop.permute.xlu1 %2246 }
 0x6ba   : > { %vm2253_vm2 = vcmp.eq.s32.totalorder %v2247_v20, 1 }
 0x6be   : > { %v2277_v33 = vpop.permute.xlu1 %2276 }
 0x6bf   : > { %vm2287_vm13 = vcmp.eq.s32.totalorder %v2277_v33, 1 }
 0x6c2   : > { %v2283_v50 = vpop.permute.xlu1 %2282 }
 0x6c3   : > { %vm2289_vm3 = vcmp.eq.s32.totalorder %v2283_v50, 1 }
 0x6c6   : > { %v2286_v44 = vpop.permute.xlu1 %2285 }
 0x6c7   : > { %vm2290_vm5 = vcmp.eq.s32.totalorder %v2286_v44, 1 }
 0x767   : > { %v2723_v16 = vpop.f32.mrb[44].mxu0 }
 0x768   : > { %v2177_v37 = vadd.f32 %v2723_v16, %v2484_v15  ;;  %v2168_v42 = vpop.f32.mrb[45].mxu0 }
 0x769   : > { %v2724_v28 = vpop.f32.mrb[46].mxu0  ;;  %v2169_v54 = vadd.f32 %v2484_v15, %v2168_v42 }
 0x76a   : > { %v2229_v30 = vmul.f32 %v2221_v32, %v2177_v37  ;;  %v2180_v45 = vadd.f32 %v2724_v28, %v2484_v15  ;;  %v2171_v26 = vpop.f32.mrb[47].mxu0  ;;  %v2209_v60 = vmul.f32 %v2200_v31, %v2177_v37 }
 0x76b   : > { %v2172_v17 = vadd.f32 %v2484_v15, %v2171_v26  ;;  %v2227_v19 = vmul.f32 %v2213_v38, %v2169_v54  ;;  %v2207_v55 = vmul.f32 %v2190_v11, %v2169_v54 }
 0x76c   : > { %v2230_v25 = vmul.f32 %v2225_v51, %v2180_v45  ;;  %2263 = vrot.lane.b32.xlu0 %v2229_v30, %s3201_s17  ;;  %v2210_v47 = vmul.f32 %v2205_v18, %v2180_v45 }
 0x76d   : > { %v2228_v8 = vmul.f32 %v2217_v23, %v2172_v17  ;;  %v2208_v13 = vmul.f32 %v2195_v14, %v2172_v17 }
 0x76e   : > { %2265 = vrot.lane.b32.xlu1 %v2230_v25, %s3201_s17 }
 0x770   : > { %2259 = vrot.lane.b32.xlu0 %v2227_v19, %s3201_s17 }
 0x772   : > { %2261 = vrot.lane.b32.xlu1 %v2228_v8, %s3201_s17  ;;  %s330_s17 = sand.u32 1, %s3179_s25  }
 0x773   : > { %s2448_s19 = sshll.u32 %s330_s17, 5 }
 0x774   : > { %2295 = vrot.lane.b32.xlu0 %v2207_v55, %s3209_s9  ;;  %s332_s15 = scalar_lea.vmem [#allocation8], %s2448_s19 }
 0x775   : > { %s2333_s18 = sshll.u32 %s332_s15, 4  ;;  %s3917_s18 = int_to_ptr.vmem [resolvable:$true] %s2333_s18 }
 0x776   : > { %2297 = vrot.lane.b32.xlu1 %v2208_v13, %s3209_s9  ;;  %s3117_s30 = scalar_lea.vmem %s3917_s18, 512  ;;  %p3124_p13 = scmp.lt.s32.totalorder %s3917_s18, %s3122_s23 }
 0x777   : > { %p3118_p12 = scmp.ne.s32.totalorder %s3917_s18, %s3117_s30  ;;  %p3125_p1 = scmp.lt.s32.totalorder %s3123_s29, %s3117_s30 }
 0x778   : > { %2299 = vrot.lane.b32.xlu0 %v2209_v60, %s3209_s9 }
 0x779   : > { %p3119_p8 = pnand %p3118_p12, %p3999_p7  ;;  %p3126_p6 = por %p3125_p1, %p3124_p13 }
 0x77a   : > { %2301 = vrot.lane.b32.xlu1 %v2210_v47, %s3209_s9  ;;  %s3930_s9 = scalar_lea.sflag [#allocation4], %s330_s17 }
 0x77b   : > { %p3120_p11 = pneg %p3119_p8 }
 0x77d   : > { %p3127_p9 = pnand %p3126_p6, %p3120_p11 }
 0x7de   : > { %v2264_v36 = vpop.permute.xlu0 %2263 }
 0x7df   : > { %v2273_v40 = vsel %vm2253_vm2, %v2209_v60, %v2264_v36 }
 0x7e0   : > { %v2266_v1 = vpop.permute.xlu1 %2265 }
 0x7e1   : > { %v2274_v3 = vsel %vm2254_vm4, %v2210_v47, %v2266_v1 }
 0x7e2   : > { %v2260_v59 = vpop.permute.xlu0 %2259 }
 0x7e3   : > { %v2271_v27 = vsel %vm2251_vm14, %v2207_v55, %v2260_v59 }
 0x7e4   : > { %v2262_v39 = vpop.permute.xlu1 %2261 }
 0x7e5   : > { %v2272_v56 = vsel %vm2252_vm15, %v2208_v13, %v2262_v39 }
 0x7e6   : > { %v2296_v35 = vpop.permute.xlu0 %2295 }
 0x7e7   : > { %v2307_v24 = vsel %vm2287_vm13, %v2227_v19, %v2296_v35 }
 0x7e8   : > { %v2311_v43 = vsel %vm2067_vm9, %v2271_v27, %v2307_v24  ;;  %v2298_v46 = vpop.permute.xlu1 %2297 }
 0x7e9   : > { %2315 = vst.msk [vmem:[%s332_s15] sm:$0xff] %vm392_vm0, %v2311_v43  ;;  %v2308_v58 = vsel %vm2288_vm1, %v2228_v8, %v2298_v46 }
 0x7ea   : > { %v2312_v48 = vsel %vm2067_vm9, %v2272_v56, %v2308_v58  ;;  %v2300_v4 = vpop.permute.xlu0 %2299 }
 0x7eb   : > { %2316 = vst.msk [vmem:[%s332_s15 + $0x8] sm:$0xff] %vm392_vm0, %v2312_v48  ;;  %v2309_v0 = vsel %vm2289_vm3, %v2229_v30, %v2300_v4 }
 0x7ec   : > { %v2313_v61 = vsel %vm2067_vm9, %v2273_v40, %v2309_v0  ;;  %v2302_v52 = vpop.permute.xlu1 %2301 }
 0x7ed   : > { %2317 = vst.msk [vmem:[%s332_s15 + $0x10] sm:$0xff] %vm392_vm0, %v2313_v61  ;;  %v2310_v49 = vsel %vm2290_vm5, %v2230_v25, %v2302_v52 }
 0x7ee   : > { %v2314_v53 = vsel %vm2067_vm9, %v2274_v3, %v2310_v49 }
 0x7ef   : > { %2318 = vst.msk [vmem:[%s332_s15 + $0x18] sm:$0xff] %vm392_vm0, %v2314_v53 }
 0x7f0   : > { %3130 = shalt.err (!%p3127_p9)
}
 0x7f1   : > { %s3131_s8 = scalar_lea.hbm %s3924_s20, 512  ;;  %s3135_s13 = scalar_lea.hbm %s3979_s7, 1024 }
 0x7f2   : > { %p3132_p2 = scmp.ne.s32.totalorder %s3924_s20, %s3131_s8  ;;  %p3136_p5 = scmp.lt.u32.totalorder %s3924_s20, %s3979_s7 }
 0x7f3   : > { %p3137_p10 = scmp.lt.u32.totalorder %s3135_s13, %s3131_s8  ;;  %p3139_p12 = scmp.lt.u32.totalorder %s3131_s8, %s3924_s20 }
 0x7f4   : > { %p3133_p3 = pnand %p3132_p2, %p3999_p7 }
 0x7f5   : > { %p3138_p4 = por %p3137_p10, %p3136_p5 }
 0x7f6   : > { %p3134_p0 = pneg %p3133_p3 }
 0x7f7   : > { %p3140_p8 = por %p3139_p12, %p3138_p4 }
 0x7f9   : > { %p3141_p11 = pnand %p3140_p8, %p3134_p0 }
 0x7fb   : > { %3144 = shalt.err (!%p3141_p11)
}
 0x7fc   : > { %s3216_s15 = smov 128  }
 0x7fd   : > { %2737 = dma.vmem_to_hbm [thread:$0]  (%p3999_p7), %s3917_s18, 512, %s3924_s20, %s3930_s9, %s3216_s15, %s3216_s15, %s3206_s22  }
 0x7fe PF: > { %p2759_p13 = scmp.ge.s32.totalorder %s3187_s27, 2  ;;  %s2348_s21 = sand.u32 1, %s3175_s24  }
 0x7ff   : > { %p4000_p1 = scmp.ne.s32.totalorder %s3990_s12, 0  ;;  %s2349_s28 = scalar_lea.sflag [#allocation4], %s2348_s21 }
 0x801   : > { %p2750_p6 = pnand %p2759_p13, %p4000_p1 }
 0x803   : > { %3170 = dma.done.wait (!%p2750_p6), %s2349_s28, 512  }
 0x804   : > { %3172 = vsyncadd (!%p2750_p6), %s2349_s28, 4294966784  ;;  %s4001_s27 = sld [smem:[#allocation13_spill]]  ;;  %s4002_s26 = sld [smem:[#allocation12_spill]] }
 0x805   : > { %s4003_s11 = sld [smem:[#allocation14_spill]]  ;;  %s4004_s24 = smov %s3179_s25 }
 0x80a   : > { %p19_p9 = scmp.ge.s32.totalorder %s4001_s27, 4   ;;  %s4005_s25 = smov %s4002_s26 }
 0x80b   : > { %s4006_s26 = smov %s4003_s11 }
 0x80c   :  { %21 = sbr.rel (!%p19_p9) target bundleno = 5 (0x5), region = 99 }
 0x813   :  { %2354 = vsyncpa [#allocation3], 1 }
 0x814   :  { %2356 = vsyncpa [#allocation3 + $0x1], 1 }
 0x815   :  { %2357 = vsyncpa [#allocation6], 1 }
 0x816   :  { %2358 = vsyncpa [#allocation4], 1 }
 0x817   :  { %2360 = vsyncpa [#allocation4 + $0x1], 1 }

</bundles_post_ra>
